<compile_context>
chip_gen: v7x
topology: tpu7x:2x2x1
jax: 0.10.0
libtpu: 0.0.40
codegen_flags: <defaults>
</compile_context>

<pallas_src>
import functools
import numpy as np
import jax
import jax.numpy as jnp
from jax.experimental import pallas as pl
from jax.experimental.pallas import tpu as pltpu


# --------------------------------------------------------------------------- #
# Pallas kernel
# --------------------------------------------------------------------------- #
def _dbhead_kernel(x_ref, w1_ref, b1_ref, w2_ref, b2_ref, w3_ref, b3_ref,
                   ml_ref, mr_ref, out_ref, *, Ws):
    f32 = jnp.float32
    x = x_ref[...]                      # (Cin, L) flat NCHW pixels
    L = x.shape[-1]
    m_left = ml_ref[...]                # (1, L): 0.0 where w == 0      (reading w-1 invalid)
    m_right = mr_ref[...]               # (1, L): 0.0 where w == Ws - 1 (reading w+1 invalid)

    def shift(v, dh, dw):
        """Value at (h+dh, w+dw) of the HxW grid, zeros outside, in flat (rows, L) form."""
        R = v.shape[0]
        u = v
        if dh == 1:
            u = jnp.concatenate([u[:, Ws:], jnp.zeros((R, Ws), f32)], axis=1)
        elif dh == -1:
            u = jnp.concatenate([jnp.zeros((R, Ws), f32), u[:, :L - Ws]], axis=1)
        if dw == 1:
            u = jnp.concatenate([u[:, 1:], jnp.zeros((R, 1), f32)], axis=1) * m_right
        elif dw == -1:
            u = jnp.concatenate([jnp.zeros((R, 1), f32), u[:, :L - 1]], axis=1) * m_left
        return u

    def patches9(v):
        # flat im2col: 9 shifted copies stacked along the sublane (row) axis
        return jnp.concatenate(
            [shift(v, dh, dw) for dh in (-1, 0, 1) for dw in (-1, 0, 1)], axis=0)

    def silu(t):
        return t * (1.0 / (1.0 + jnp.exp(-t)))

    # Stage 1: fused 3x3 conv (binarize || thresh)            -> (2*C4, L)
    a1 = silu(jnp.dot(w1_ref[...], patches9(x),
                      preferred_element_type=f32) + b1_ref[...])
    # Stage 2: fused ConvTranspose2d(4,2,1), 4 output phases  -> (4*2*C4, L)
    a2 = silu(jnp.dot(w2_ref[...], patches9(a1),
                      preferred_element_type=f32) + b2_ref[...])
    # Stage 3: fused final ConvTranspose2d(C4 -> 1) for both branches,
    #          2 channels x 16 output phases on rows          -> (32, L)
    y3 = jnp.dot(w3_ref[...], patches9(a2),
                 preferred_element_type=f32) + b3_ref[...]
    half = y3.shape[0] // 2
    shrink = y3[:half, :]
    thresh = 1.0 / (1.0 + jnp.exp(-y3[half:, :]))           # thresh branch ends in Sigmoid
    out_ref[...] = jnp.concatenate([shrink, thresh], axis=0).astype(out_ref.dtype)


# --------------------------------------------------------------------------- #
# Host-side fused-weight construction (numpy, tiny)
# --------------------------------------------------------------------------- #
def _taps(phase):
    """ConvTranspose2d(k=4, s=2, p=1): output index = 2*i + phase.
    Returns [(input offset m, kernel index k)] pairs contributing to that phase."""
    return [(m, phase + 1 - 2 * m) for m in range(-1, 3)
            if 0 <= phase + 1 - 2 * m < 4]


def _build_fused_weights(params):
    wb1 = np.asarray(params['bin_conv_w'], np.float32)
    wt1 = np.asarray(params['thr_conv_w'], np.float32)
    C4, Cin = wb1.shape[0], wb1.shape[1]
    C2 = 2 * C4

    # ---- Stage 1: dense 3x3 conv, both branches on output rows ----
    w1cat = np.concatenate([wb1, wt1], axis=0)                        # (C2, Cin, 3, 3)
    W1 = np.transpose(w1cat, (0, 2, 3, 1)).reshape(C2, 9 * Cin)       # cols = (kh, kw, ci)
    b1 = np.concatenate([np.asarray(params['bin_conv_b'], np.float32),
                         np.zeros((C4,), np.float32)]).reshape(C2, 1)  # thresh conv: bias=False

    # ---- Stage 2: first transpose conv, block-diagonal branch fusion ----
    w2d = np.zeros((C2, C2, 4, 4), np.float32)                        # [c_in, c_out, ky, kx]
    w2d[:C4, :C4] = np.asarray(params['bin_up1_w'], np.float32)
    w2d[C4:, C4:] = np.asarray(params['thr_up1_w'], np.float32)
    b2cat = np.concatenate([np.asarray(params['bin_up1_b'], np.float32),
                            np.asarray(params['thr_up1_b'], np.float32)])
    W2 = np.zeros((4 * C2, 9 * C2), np.float32)                       # rows = (py, px, c_out)
    b2 = np.zeros((4 * C2, 1), np.float32)
    for py in range(2):
        for px in range(2):
            rbase = (py * 2 + px) * C2
            b2[rbase:rbase + C2, 0] = b2cat
            for dh, ky in _taps(py):
                for dw, kx in _taps(px):
                    t = (dh + 1) * 3 + (dw + 1)
                    W2[rbase:rbase + C2, t * C2:(t + 1) * C2] = w2d[:, :, ky, kx].T

    # ---- Stage 3: final transpose conv (C4 -> 1) for both branches, consuming
    #      the 4 stage-2 phase images -> 16 output phases per channel ----
    w3d = np.zeros((C2, 2, 4, 4), np.float32)                         # [c_in, ch, ky, kx]
    w3d[:C4, 0] = np.asarray(params['bin_up2_w'], np.float32)[:, 0]
    w3d[C4:, 1] = np.asarray(params['thr_up2_w'], np.float32)[:, 0]
    b3cat = np.array([float(np.asarray(params['bin_up2_b'])[0]),
                      float(np.asarray(params['thr_up2_b'])[0])], np.float32)
    W3 = np.zeros((2 * 16, 9 * 4 * C2), np.float32)                   # rows = (ch, r, s)
    b3 = np.zeros((2 * 16, 1), np.float32)
    for ch in range(2):
        for r in range(4):                                            # final row = 4h + r
            for s in range(4):                                        # final col = 4w + s
                row = ch * 16 + r * 4 + s
                b3[row, 0] = b3cat[ch]
                for mr, ky in _taps(r):                               # y2 row = 2h + mr
                    pyp, dh = mr % 2, (mr - mr % 2) // 2
                    for mc, kx in _taps(s):
                        pxp, dw = mc % 2, (mc - mc % 2) // 2
                        t = (dh + 1) * 3 + (dw + 1)
                        col = (t * 4 + pyp * 2 + pxp) * C2
                        W3[row, col:col + C2] = w3d[:, ch, ky, kx]

    return {k: jnp.asarray(v) for k, v in
            dict(W1=W1, b1=b1, W2=W2, b2=b2, W3=W3, b3=b3).items()}


# --------------------------------------------------------------------------- #
# Wrapper
# --------------------------------------------------------------------------- #
def dbhead_forward(x, params, k=50, training=False):
    """x: (N, Cin, H, W) float32 NCHW -> (N, 2, 4H, 4W) (3 channels if training)."""
    N, Cin, H, W = x.shape
    L = H * W
    NROWS = 2 * 16                                     # (channel, row-phase, col-phase)

    fw = _build_fused_weights(params)

    wpos = np.arange(L, dtype=np.int64) % W
    m_left = jnp.asarray((wpos != 0).astype(np.float32).reshape(1, L))
    m_right = jnp.asarray((wpos != (W - 1)).astype(np.float32).reshape(1, L))

    x_flat = x.reshape(N, Cin, L).astype(jnp.float32)  # free row-major view, no transpose

    weights = [fw['W1'], fw['b1'], fw['W2'], fw['b2'], fw['W3'], fw['b3'],
               m_left, m_right]

    def full_spec(a):
        nd = a.ndim
        return pl.BlockSpec(a.shape, lambda n, _nd=nd: (0,) * _nd)

    in_specs = [pl.BlockSpec((pl.Squeezed(), Cin, L), lambda n: (n, 0, 0))]
    in_specs += [full_spec(w) for w in weights]

    kern = functools.partial(_dbhead_kernel, Ws=W)

    out = pl.pallas_call(
        kern,
        out_shape=jax.ShapeDtypeStruct((N, NROWS, L), jnp.float32),
        grid_spec=pltpu.PrefetchScalarGridSpec(
            num_scalar_prefetch=0,
            grid=(N,),
            in_specs=in_specs,
            out_specs=pl.BlockSpec((pl.Squeezed(), NROWS, L), lambda n: (n, 0, 0)),
        ),
        compiler_params=pltpu.CompilerParams(
            dimension_semantics=("parallel",),
            vmem_limit_bytes=32 * 1024 * 1024),
    )(x_flat, *weights)

    # phase -> pixel shuffle of the small 2-channel output (rows = ch*16 + r*4 + s)
    y = (out.reshape(N, 2, 4, 4, H, W)
            .transpose(0, 1, 4, 2, 5, 3)
            .reshape(N, 2, 4 * H, 4 * W))

    if training:  # DBHead training branch (trivial elementwise epilogue, plain JAX)
        shrink, thresh = y[:, 0:1], y[:, 1:2]
        binary = jax.nn.sigmoid(k * (jax.nn.sigmoid(shrink) - thresh))
        y = jnp.concatenate([shrink, thresh, binary], axis=1)
    return y


# --------------------------------------------------------------------------- #
# Pure-JAX reference (independent conv implementation)
# --------------------------------------------------------------------------- #
def _reference(x, params):
    dn = ('NCHW', 'OIHW', 'NCHW')
    hi = jax.lax.Precision.HIGHEST

    def conv3(v, w, b):
        y = jax.lax.conv_general_dilated(v, w, (1, 1), ((1, 1), (1, 1)),
                                         dimension_numbers=dn, precision=hi)
        return y if b is None else y + b[None, :, None, None]

    def convT(v, w, b):  # ConvTranspose2d(k=4, s=2, p=1), w in PyTorch (I, O, kH, kW)
        wf = jnp.transpose(w[:, :, ::-1, ::-1], (1, 0, 2, 3))
        y = jax.lax.conv_general_dilated(v, wf, (1, 1), ((2, 2), (2, 2)),
                                         lhs_dilation=(2, 2),
                                         dimension_numbers=dn, precision=hi)
        return y + b[None, :, None, None]

    silu = lambda t: t * jax.nn.sigmoid(t)
    b = silu(conv3(x, params['bin_conv_w'], params['bin_conv_b']))
    b = silu(convT(b, params['bin_up1_w'], params['bin_up1_b']))
    shrink = convT(b, params['bin_up2_w'], params['bin_up2_b'])
    t = silu(conv3(x, params['thr_conv_w'], None))
    t = silu(convT(t, params['thr_up1_w'], params['thr_up1_b']))
    thresh = jax.nn.sigmoid(convT(t, params['thr_up2_w'], params['thr_up2_b']))
    return jnp.concatenate([shrink, thresh], axis=1)


def init_params(key, in_channels):
    """Deterministic synthetic parameters in PyTorch layouts."""
    c4 = in_channels // 4
    ks = jax.random.split(key, 11)
    n = lambda kk, shape: jax.random.normal(kk, shape, jnp.float32) * 0.1
    return {
        'bin_conv_w': n(ks[0], (c4, in_channels, 3, 3)),
        'bin_conv_b': n(ks[1], (c4,)),
        'thr_conv_w': n(ks[2], (c4, in_channels, 3, 3)),     # bias=False in the module
        'bin_up1_w': n(ks[3], (c4, c4, 4, 4)),
        'bin_up1_b': n(ks[4], (c4,)),
        'thr_up1_w': n(ks[5], (c4, c4, 4, 4)),
        'thr_up1_b': n(ks[6], (c4,)),
        'bin_up2_w': n(ks[7], (c4, 1, 4, 4)),
        'bin_up2_b': n(ks[8], (1,)),
        'thr_up2_w': n(ks[9], (c4, 1, 4, 4)),
        'thr_up2_b': n(ks[10], (1,)),
    }


if __name__ == "__main__":
    key = jax.random.PRNGKey(0)
    kx, kp = jax.random.split(key)

    # DBHead(in_channels=16): inner channels = 4, input 16x16, output (N, 2, 64, 64)
    N, in_channels, H, W = 2, 16, 16, 16
    x = jax.random.normal(kx, (N, in_channels, H, W), jnp.float32)
    params = init_params(kp, in_channels)

    out = jax.block_until_ready(dbhead_forward(x, params))
    ref = jax.block_until_ready(_reference(x, params))

    assert out.shape == (N, 2, 4 * H, 4 * W), out.shape
    np.testing.assert_allclose(np.asarray(out), np.asarray(ref), rtol=3e-3, atol=3e-3)
    print("KERNEL_OK")
</pallas_src>

<mosaic_0001>
module attributes {stable_mosaic.version = 11 : i64} {
  func.func @_dbhead_kernel(%arg0: i32, %arg1: memref<1x16x256xf32, #tpu.memory_space<vmem>>, %arg2: memref<8x144xf32, #tpu.memory_space<vmem>>, %arg3: memref<8x1xf32, #tpu.memory_space<vmem>>, %arg4: memref<32x72xf32, #tpu.memory_space<vmem>>, %arg5: memref<32x1xf32, #tpu.memory_space<vmem>>, %arg6: memref<32x288xf32, #tpu.memory_space<vmem>>, %arg7: memref<32x1xf32, #tpu.memory_space<vmem>>, %arg8: memref<1x256xf32, #tpu.memory_space<vmem>>, %arg9: memref<1x256xf32, #tpu.memory_space<vmem>>, %arg10: memref<1x32x256xf32, #tpu.memory_space<vmem>>) attributes {dimension_semantics = [#tpu.dimension_semantics<parallel>], iteration_bounds = array<i64: 2>, scalar_prefetch = 0 : i64, scratch_operands = 0 : i64, tpu.core_type = #tpu.core_type<tc>, window_params = [{transform_indices = @transform_0, window_bounds = array<i64: 1, 16, 256>}, {pipeline_mode = #tpu.pipeline_mode<synchronous>, transform_indices = @transform_1, window_bounds = array<i64: 8, 144>}, {pipeline_mode = #tpu.pipeline_mode<synchronous>, transform_indices = @transform_2, window_bounds = array<i64: 8, 1>}, {pipeline_mode = #tpu.pipeline_mode<synchronous>, transform_indices = @transform_3, window_bounds = array<i64: 32, 72>}, {pipeline_mode = #tpu.pipeline_mode<synchronous>, transform_indices = @transform_4, window_bounds = array<i64: 32, 1>}, {pipeline_mode = #tpu.pipeline_mode<synchronous>, transform_indices = @transform_5, window_bounds = array<i64: 32, 288>}, {pipeline_mode = #tpu.pipeline_mode<synchronous>, transform_indices = @transform_6, window_bounds = array<i64: 32, 1>}, {pipeline_mode = #tpu.pipeline_mode<synchronous>, transform_indices = @transform_7, window_bounds = array<i64: 1, 256>}, {pipeline_mode = #tpu.pipeline_mode<synchronous>, transform_indices = @transform_8, window_bounds = array<i64: 1, 256>}, {transform_indices = @transform_9, window_bounds = array<i64: 1, 32, 256>}]} {
    %c0 = arith.constant 0 : index
    %c0_0 = arith.constant 0 : index
    %c0_1 = arith.constant 0 : index
    %0 = vector.load %arg1[%c0, %c0_0, %c0_1] : memref<1x16x256xf32, #tpu.memory_space<vmem>>, vector<1x16x256xf32>
    %1 = vector.shape_cast %0 : vector<1x16x256xf32> to vector<16x256xf32>
    %c0_2 = arith.constant 0 : index
    %c0_3 = arith.constant 0 : index
    %2 = vector.load %arg8[%c0_2, %c0_3] : memref<1x256xf32, #tpu.memory_space<vmem>>, vector<1x256xf32>
    %c0_4 = arith.constant 0 : index
    %c0_5 = arith.constant 0 : index
    %3 = vector.load %arg9[%c0_4, %c0_5] : memref<1x256xf32, #tpu.memory_space<vmem>>, vector<1x256xf32>
    %c0_6 = arith.constant 0 : index
    %c0_7 = arith.constant 0 : index
    %4 = vector.load %arg2[%c0_6, %c0_7] : memref<8x144xf32, #tpu.memory_space<vmem>>, vector<8x144xf32>
    %cst = arith.constant 0.000000e+00 : f32
    %5 = vector.broadcast %cst : f32 to vector<16x16xf32>
    %6 = vector.extract_strided_slice %1 {offsets = [0, 0], sizes = [16, 240], strides = [1, 1]} : vector<16x256xf32> to vector<16x240xf32>
    %7 = tpu.concatenate %5, %6 in 1 : vector<16x16xf32>, vector<16x240xf32> -> vector<16x256xf32>
    %cst_8 = arith.constant 0.000000e+00 : f32
    %8 = vector.broadcast %cst_8 : f32 to vector<16x1xf32>
    %9 = vector.extract_strided_slice %7 {offsets = [0, 0], sizes = [16, 255], strides = [1, 1]} : vector<16x256xf32> to vector<16x255xf32>
    %10 = tpu.concatenate %8, %9 in 1 : vector<16x1xf32>, vector<16x255xf32> -> vector<16x256xf32>
    %11 = vector.broadcast %2 : vector<1x256xf32> to vector<16x256xf32>
    %12 = arith.mulf %10, %11 : vector<16x256xf32>
    %cst_9 = arith.constant 0.000000e+00 : f32
    %13 = vector.broadcast %cst_9 : f32 to vector<16x16xf32>
    %14 = vector.extract_strided_slice %1 {offsets = [0, 0], sizes = [16, 240], strides = [1, 1]} : vector<16x256xf32> to vector<16x240xf32>
    %15 = tpu.concatenate %13, %14 in 1 : vector<16x16xf32>, vector<16x240xf32> -> vector<16x256xf32>
    %cst_10 = arith.constant 0.000000e+00 : f32
    %16 = vector.broadcast %cst_10 : f32 to vector<16x16xf32>
    %17 = vector.extract_strided_slice %1 {offsets = [0, 0], sizes = [16, 240], strides = [1, 1]} : vector<16x256xf32> to vector<16x240xf32>
    %18 = tpu.concatenate %16, %17 in 1 : vector<16x16xf32>, vector<16x240xf32> -> vector<16x256xf32>
    %19 = vector.extract_strided_slice %18 {offsets = [0, 1], sizes = [16, 255], strides = [1, 1]} : vector<16x256xf32> to vector<16x255xf32>
    %cst_11 = arith.constant 0.000000e+00 : f32
    %20 = vector.broadcast %cst_11 : f32 to vector<16x1xf32>
    %21 = tpu.concatenate %19, %20 in 1 : vector<16x255xf32>, vector<16x1xf32> -> vector<16x256xf32>
    %22 = vector.broadcast %3 : vector<1x256xf32> to vector<16x256xf32>
    %23 = arith.mulf %21, %22 : vector<16x256xf32>
    %cst_12 = arith.constant 0.000000e+00 : f32
    %24 = vector.broadcast %cst_12 : f32 to vector<16x1xf32>
    %25 = vector.extract_strided_slice %1 {offsets = [0, 0], sizes = [16, 255], strides = [1, 1]} : vector<16x256xf32> to vector<16x255xf32>
    %26 = tpu.concatenate %24, %25 in 1 : vector<16x1xf32>, vector<16x255xf32> -> vector<16x256xf32>
    %27 = vector.broadcast %2 : vector<1x256xf32> to vector<16x256xf32>
    %28 = arith.mulf %26, %27 : vector<16x256xf32>
    %29 = vector.extract_strided_slice %1 {offsets = [0, 1], sizes = [16, 255], strides = [1, 1]} : vector<16x256xf32> to vector<16x255xf32>
    %cst_13 = arith.constant 0.000000e+00 : f32
    %30 = vector.broadcast %cst_13 : f32 to vector<16x1xf32>
    %31 = tpu.concatenate %29, %30 in 1 : vector<16x255xf32>, vector<16x1xf32> -> vector<16x256xf32>
    %32 = vector.broadcast %3 : vector<1x256xf32> to vector<16x256xf32>
    %33 = arith.mulf %31, %32 : vector<16x256xf32>
    %34 = vector.extract_strided_slice %1 {offsets = [0, 16], sizes = [16, 240], strides = [1, 1]} : vector<16x256xf32> to vector<16x240xf32>
    %cst_14 = arith.constant 0.000000e+00 : f32
    %35 = vector.broadcast %cst_14 : f32 to vector<16x16xf32>
    %36 = tpu.concatenate %34, %35 in 1 : vector<16x240xf32>, vector<16x16xf32> -> vector<16x256xf32>
    %cst_15 = arith.constant 0.000000e+00 : f32
    %37 = vector.broadcast %cst_15 : f32 to vector<16x1xf32>
    %38 = vector.extract_strided_slice %36 {offsets = [0, 0], sizes = [16, 255], strides = [1, 1]} : vector<16x256xf32> to vector<16x255xf32>
    %39 = tpu.concatenate %37, %38 in 1 : vector<16x1xf32>, vector<16x255xf32> -> vector<16x256xf32>
    %40 = vector.broadcast %2 : vector<1x256xf32> to vector<16x256xf32>
    %41 = arith.mulf %39, %40 : vector<16x256xf32>
    %42 = vector.extract_strided_slice %1 {offsets = [0, 16], sizes = [16, 240], strides = [1, 1]} : vector<16x256xf32> to vector<16x240xf32>
    %cst_16 = arith.constant 0.000000e+00 : f32
    %43 = vector.broadcast %cst_16 : f32 to vector<16x16xf32>
    %44 = tpu.concatenate %42, %43 in 1 : vector<16x240xf32>, vector<16x16xf32> -> vector<16x256xf32>
    %45 = vector.extract_strided_slice %1 {offsets = [0, 16], sizes = [16, 240], strides = [1, 1]} : vector<16x256xf32> to vector<16x240xf32>
    %cst_17 = arith.constant 0.000000e+00 : f32
    %46 = vector.broadcast %cst_17 : f32 to vector<16x16xf32>
    %47 = tpu.concatenate %45, %46 in 1 : vector<16x240xf32>, vector<16x16xf32> -> vector<16x256xf32>
    %48 = vector.extract_strided_slice %47 {offsets = [0, 1], sizes = [16, 255], strides = [1, 1]} : vector<16x256xf32> to vector<16x255xf32>
    %cst_18 = arith.constant 0.000000e+00 : f32
    %49 = vector.broadcast %cst_18 : f32 to vector<16x1xf32>
    %50 = tpu.concatenate %48, %49 in 1 : vector<16x255xf32>, vector<16x1xf32> -> vector<16x256xf32>
    %51 = vector.broadcast %3 : vector<1x256xf32> to vector<16x256xf32>
    %52 = arith.mulf %50, %51 : vector<16x256xf32>
    %53 = tpu.concatenate %12, %15, %23, %28, %1, %33, %41, %44, %52 in 0 : vector<16x256xf32>, vector<16x256xf32>, vector<16x256xf32>, vector<16x256xf32>, vector<16x256xf32>, vector<16x256xf32>, vector<16x256xf32>, vector<16x256xf32>, vector<16x256xf32> -> vector<144x256xf32>
    %cst_19 = arith.constant dense<0.000000e+00> : vector<8x256xf32>
    %54 = tpu.matmul %4, %53, %cst_19 {dimension_numbers = #tpu.dot_dimension_numbers<[1], [0], [0], [1], [0, 0, 1, 1], [], []>} : vector<8x144xf32>, vector<144x256xf32>, vector<8x256xf32> -> vector<8x256xf32>
    %c0_20 = arith.constant 0 : index
    %c0_21 = arith.constant 0 : index
    %55 = vector.load %arg3[%c0_20, %c0_21] : memref<8x1xf32, #tpu.memory_space<vmem>>, vector<8x1xf32>
    %56 = vector.broadcast %55 : vector<8x1xf32> to vector<8x256xf32>
    %57 = arith.addf %54, %56 : vector<8x256xf32>
    %cst_22 = arith.constant 0.000000e+00 : f32
    %58 = vector.broadcast %cst_22 : f32 to vector<8x256xf32>
    %59 = arith.subf %58, %57 : vector<8x256xf32>
    %60 = math.exp %59 : vector<8x256xf32>
    %cst_23 = arith.constant 1.000000e+00 : f32
    %61 = vector.broadcast %cst_23 : f32 to vector<8x256xf32>
    %62 = arith.addf %61, %60 : vector<8x256xf32>
    %cst_24 = arith.constant 1.000000e+00 : f32
    %63 = vector.broadcast %cst_24 : f32 to vector<8x256xf32>
    %64 = arith.divf %63, %62 : vector<8x256xf32>
    %65 = arith.mulf %57, %64 : vector<8x256xf32>
    %c0_25 = arith.constant 0 : index
    %c0_26 = arith.constant 0 : index
    %66 = vector.load %arg4[%c0_25, %c0_26] : memref<32x72xf32, #tpu.memory_space<vmem>>, vector<32x72xf32>
    %cst_27 = arith.constant 0.000000e+00 : f32
    %67 = vector.broadcast %cst_27 : f32 to vector<8x16xf32>
    %68 = vector.extract_strided_slice %65 {offsets = [0, 0], sizes = [8, 240], strides = [1, 1]} : vector<8x256xf32> to vector<8x240xf32>
    %69 = tpu.concatenate %67, %68 in 1 : vector<8x16xf32>, vector<8x240xf32> -> vector<8x256xf32>
    %cst_28 = arith.constant 0.000000e+00 : f32
    %70 = vector.broadcast %cst_28 : f32 to vector<8x1xf32>
    %71 = vector.extract_strided_slice %69 {offsets = [0, 0], sizes = [8, 255], strides = [1, 1]} : vector<8x256xf32> to vector<8x255xf32>
    %72 = tpu.concatenate %70, %71 in 1 : vector<8x1xf32>, vector<8x255xf32> -> vector<8x256xf32>
    %73 = vector.broadcast %2 : vector<1x256xf32> to vector<8x256xf32>
    %74 = arith.mulf %72, %73 : vector<8x256xf32>
    %cst_29 = arith.constant 0.000000e+00 : f32
    %75 = vector.broadcast %cst_29 : f32 to vector<8x16xf32>
    %76 = vector.extract_strided_slice %65 {offsets = [0, 0], sizes = [8, 240], strides = [1, 1]} : vector<8x256xf32> to vector<8x240xf32>
    %77 = tpu.concatenate %75, %76 in 1 : vector<8x16xf32>, vector<8x240xf32> -> vector<8x256xf32>
    %cst_30 = arith.constant 0.000000e+00 : f32
    %78 = vector.broadcast %cst_30 : f32 to vector<8x16xf32>
    %79 = vector.extract_strided_slice %65 {offsets = [0, 0], sizes = [8, 240], strides = [1, 1]} : vector<8x256xf32> to vector<8x240xf32>
    %80 = tpu.concatenate %78, %79 in 1 : vector<8x16xf32>, vector<8x240xf32> -> vector<8x256xf32>
    %81 = vector.extract_strided_slice %80 {offsets = [0, 1], sizes = [8, 255], strides = [1, 1]} : vector<8x256xf32> to vector<8x255xf32>
    %cst_31 = arith.constant 0.000000e+00 : f32
    %82 = vector.broadcast %cst_31 : f32 to vector<8x1xf32>
    %83 = tpu.concatenate %81, %82 in 1 : vector<8x255xf32>, vector<8x1xf32> -> vector<8x256xf32>
    %84 = vector.broadcast %3 : vector<1x256xf32> to vector<8x256xf32>
    %85 = arith.mulf %83, %84 : vector<8x256xf32>
    %cst_32 = arith.constant 0.000000e+00 : f32
    %86 = vector.broadcast %cst_32 : f32 to vector<8x1xf32>
    %87 = vector.extract_strided_slice %65 {offsets = [0, 0], sizes = [8, 255], strides = [1, 1]} : vector<8x256xf32> to vector<8x255xf32>
    %88 = tpu.concatenate %86, %87 in 1 : vector<8x1xf32>, vector<8x255xf32> -> vector<8x256xf32>
    %89 = vector.broadcast %2 : vector<1x256xf32> to vector<8x256xf32>
    %90 = arith.mulf %88, %89 : vector<8x256xf32>
    %91 = vector.extract_strided_slice %65 {offsets = [0, 1], sizes = [8, 255], strides = [1, 1]} : vector<8x256xf32> to vector<8x255xf32>
    %cst_33 = arith.constant 0.000000e+00 : f32
    %92 = vector.broadcast %cst_33 : f32 to vector<8x1xf32>
    %93 = tpu.concatenate %91, %92 in 1 : vector<8x255xf32>, vector<8x1xf32> -> vector<8x256xf32>
    %94 = vector.broadcast %3 : vector<1x256xf32> to vector<8x256xf32>
    %95 = arith.mulf %93, %94 : vector<8x256xf32>
    %96 = vector.extract_strided_slice %65 {offsets = [0, 16], sizes = [8, 240], strides = [1, 1]} : vector<8x256xf32> to vector<8x240xf32>
    %cst_34 = arith.constant 0.000000e+00 : f32
    %97 = vector.broadcast %cst_34 : f32 to vector<8x16xf32>
    %98 = tpu.concatenate %96, %97 in 1 : vector<8x240xf32>, vector<8x16xf32> -> vector<8x256xf32>
    %cst_35 = arith.constant 0.000000e+00 : f32
    %99 = vector.broadcast %cst_35 : f32 to vector<8x1xf32>
    %100 = vector.extract_strided_slice %98 {offsets = [0, 0], sizes = [8, 255], strides = [1, 1]} : vector<8x256xf32> to vector<8x255xf32>
    %101 = tpu.concatenate %99, %100 in 1 : vector<8x1xf32>, vector<8x255xf32> -> vector<8x256xf32>
    %102 = vector.broadcast %2 : vector<1x256xf32> to vector<8x256xf32>
    %103 = arith.mulf %101, %102 : vector<8x256xf32>
    %104 = vector.extract_strided_slice %65 {offsets = [0, 16], sizes = [8, 240], strides = [1, 1]} : vector<8x256xf32> to vector<8x240xf32>
    %cst_36 = arith.constant 0.000000e+00 : f32
    %105 = vector.broadcast %cst_36 : f32 to vector<8x16xf32>
    %106 = tpu.concatenate %104, %105 in 1 : vector<8x240xf32>, vector<8x16xf32> -> vector<8x256xf32>
    %107 = vector.extract_strided_slice %65 {offsets = [0, 16], sizes = [8, 240], strides = [1, 1]} : vector<8x256xf32> to vector<8x240xf32>
    %cst_37 = arith.constant 0.000000e+00 : f32
    %108 = vector.broadcast %cst_37 : f32 to vector<8x16xf32>
    %109 = tpu.concatenate %107, %108 in 1 : vector<8x240xf32>, vector<8x16xf32> -> vector<8x256xf32>
    %110 = vector.extract_strided_slice %109 {offsets = [0, 1], sizes = [8, 255], strides = [1, 1]} : vector<8x256xf32> to vector<8x255xf32>
    %cst_38 = arith.constant 0.000000e+00 : f32
    %111 = vector.broadcast %cst_38 : f32 to vector<8x1xf32>
    %112 = tpu.concatenate %110, %111 in 1 : vector<8x255xf32>, vector<8x1xf32> -> vector<8x256xf32>
    %113 = vector.broadcast %3 : vector<1x256xf32> to vector<8x256xf32>
    %114 = arith.mulf %112, %113 : vector<8x256xf32>
    %115 = tpu.concatenate %74, %77, %85, %90, %65, %95, %103, %106, %114 in 0 : vector<8x256xf32>, vector<8x256xf32>, vector<8x256xf32>, vector<8x256xf32>, vector<8x256xf32>, vector<8x256xf32>, vector<8x256xf32>, vector<8x256xf32>, vector<8x256xf32> -> vector<72x256xf32>
    %cst_39 = arith.constant dense<0.000000e+00> : vector<32x256xf32>
    %116 = tpu.matmul %66, %115, %cst_39 {dimension_numbers = #tpu.dot_dimension_numbers<[1], [0], [0], [1], [0, 0, 1, 1], [], []>} : vector<32x72xf32>, vector<72x256xf32>, vector<32x256xf32> -> vector<32x256xf32>
    %c0_40 = arith.constant 0 : index
    %c0_41 = arith.constant 0 : index
    %117 = vector.load %arg5[%c0_40, %c0_41] : memref<32x1xf32, #tpu.memory_space<vmem>>, vector<32x1xf32>
    %118 = vector.broadcast %117 : vector<32x1xf32> to vector<32x256xf32>
    %119 = arith.addf %116, %118 : vector<32x256xf32>
    %cst_42 = arith.constant 0.000000e+00 : f32
    %120 = vector.broadcast %cst_42 : f32 to vector<32x256xf32>
    %121 = arith.subf %120, %119 : vector<32x256xf32>
    %122 = math.exp %121 : vector<32x256xf32>
    %cst_43 = arith.constant 1.000000e+00 : f32
    %123 = vector.broadcast %cst_43 : f32 to vector<32x256xf32>
    %124 = arith.addf %123, %122 : vector<32x256xf32>
    %cst_44 = arith.constant 1.000000e+00 : f32
    %125 = vector.broadcast %cst_44 : f32 to vector<32x256xf32>
    %126 = arith.divf %125, %124 : vector<32x256xf32>
    %127 = arith.mulf %119, %126 : vector<32x256xf32>
    %c0_45 = arith.constant 0 : index
    %c0_46 = arith.constant 0 : index
    %128 = vector.load %arg6[%c0_45, %c0_46] : memref<32x288xf32, #tpu.memory_space<vmem>>, vector<32x288xf32>
    %cst_47 = arith.constant 0.000000e+00 : f32
    %129 = vector.broadcast %cst_47 : f32 to vector<32x16xf32>
    %130 = vector.extract_strided_slice %127 {offsets = [0, 0], sizes = [32, 240], strides = [1, 1]} : vector<32x256xf32> to vector<32x240xf32>
    %131 = tpu.concatenate %129, %130 in 1 : vector<32x16xf32>, vector<32x240xf32> -> vector<32x256xf32>
    %cst_48 = arith.constant 0.000000e+00 : f32
    %132 = vector.broadcast %cst_48 : f32 to vector<32x1xf32>
    %133 = vector.extract_strided_slice %131 {offsets = [0, 0], sizes = [32, 255], strides = [1, 1]} : vector<32x256xf32> to vector<32x255xf32>
    %134 = tpu.concatenate %132, %133 in 1 : vector<32x1xf32>, vector<32x255xf32> -> vector<32x256xf32>
    %135 = vector.broadcast %2 : vector<1x256xf32> to vector<32x256xf32>
    %136 = arith.mulf %134, %135 : vector<32x256xf32>
    %cst_49 = arith.constant 0.000000e+00 : f32
    %137 = vector.broadcast %cst_49 : f32 to vector<32x16xf32>
    %138 = vector.extract_strided_slice %127 {offsets = [0, 0], sizes = [32, 240], strides = [1, 1]} : vector<32x256xf32> to vector<32x240xf32>
    %139 = tpu.concatenate %137, %138 in 1 : vector<32x16xf32>, vector<32x240xf32> -> vector<32x256xf32>
    %cst_50 = arith.constant 0.000000e+00 : f32
    %140 = vector.broadcast %cst_50 : f32 to vector<32x16xf32>
    %141 = vector.extract_strided_slice %127 {offsets = [0, 0], sizes = [32, 240], strides = [1, 1]} : vector<32x256xf32> to vector<32x240xf32>
    %142 = tpu.concatenate %140, %141 in 1 : vector<32x16xf32>, vector<32x240xf32> -> vector<32x256xf32>
    %143 = vector.extract_strided_slice %142 {offsets = [0, 1], sizes = [32, 255], strides = [1, 1]} : vector<32x256xf32> to vector<32x255xf32>
    %cst_51 = arith.constant 0.000000e+00 : f32
    %144 = vector.broadcast %cst_51 : f32 to vector<32x1xf32>
    %145 = tpu.concatenate %143, %144 in 1 : vector<32x255xf32>, vector<32x1xf32> -> vector<32x256xf32>
    %146 = vector.broadcast %3 : vector<1x256xf32> to vector<32x256xf32>
    %147 = arith.mulf %145, %146 : vector<32x256xf32>
    %cst_52 = arith.constant 0.000000e+00 : f32
    %148 = vector.broadcast %cst_52 : f32 to vector<32x1xf32>
    %149 = vector.extract_strided_slice %127 {offsets = [0, 0], sizes = [32, 255], strides = [1, 1]} : vector<32x256xf32> to vector<32x255xf32>
    %150 = tpu.concatenate %148, %149 in 1 : vector<32x1xf32>, vector<32x255xf32> -> vector<32x256xf32>
    %151 = vector.broadcast %2 : vector<1x256xf32> to vector<32x256xf32>
    %152 = arith.mulf %150, %151 : vector<32x256xf32>
    %153 = vector.extract_strided_slice %127 {offsets = [0, 1], sizes = [32, 255], strides = [1, 1]} : vector<32x256xf32> to vector<32x255xf32>
    %cst_53 = arith.constant 0.000000e+00 : f32
    %154 = vector.broadcast %cst_53 : f32 to vector<32x1xf32>
    %155 = tpu.concatenate %153, %154 in 1 : vector<32x255xf32>, vector<32x1xf32> -> vector<32x256xf32>
    %156 = vector.broadcast %3 : vector<1x256xf32> to vector<32x256xf32>
    %157 = arith.mulf %155, %156 : vector<32x256xf32>
    %158 = vector.extract_strided_slice %127 {offsets = [0, 16], sizes = [32, 240], strides = [1, 1]} : vector<32x256xf32> to vector<32x240xf32>
    %cst_54 = arith.constant 0.000000e+00 : f32
    %159 = vector.broadcast %cst_54 : f32 to vector<32x16xf32>
    %160 = tpu.concatenate %158, %159 in 1 : vector<32x240xf32>, vector<32x16xf32> -> vector<32x256xf32>
    %cst_55 = arith.constant 0.000000e+00 : f32
    %161 = vector.broadcast %cst_55 : f32 to vector<32x1xf32>
    %162 = vector.extract_strided_slice %160 {offsets = [0, 0], sizes = [32, 255], strides = [1, 1]} : vector<32x256xf32> to vector<32x255xf32>
    %163 = tpu.concatenate %161, %162 in 1 : vector<32x1xf32>, vector<32x255xf32> -> vector<32x256xf32>
    %164 = vector.broadcast %2 : vector<1x256xf32> to vector<32x256xf32>
    %165 = arith.mulf %163, %164 : vector<32x256xf32>
    %166 = vector.extract_strided_slice %127 {offsets = [0, 16], sizes = [32, 240], strides = [1, 1]} : vector<32x256xf32> to vector<32x240xf32>
    %cst_56 = arith.constant 0.000000e+00 : f32
    %167 = vector.broadcast %cst_56 : f32 to vector<32x16xf32>
    %168 = tpu.concatenate %166, %167 in 1 : vector<32x240xf32>, vector<32x16xf32> -> vector<32x256xf32>
    %169 = vector.extract_strided_slice %127 {offsets = [0, 16], sizes = [32, 240], strides = [1, 1]} : vector<32x256xf32> to vector<32x240xf32>
    %cst_57 = arith.constant 0.000000e+00 : f32
    %170 = vector.broadcast %cst_57 : f32 to vector<32x16xf32>
    %171 = tpu.concatenate %169, %170 in 1 : vector<32x240xf32>, vector<32x16xf32> -> vector<32x256xf32>
    %172 = vector.extract_strided_slice %171 {offsets = [0, 1], sizes = [32, 255], strides = [1, 1]} : vector<32x256xf32> to vector<32x255xf32>
    %cst_58 = arith.constant 0.000000e+00 : f32
    %173 = vector.broadcast %cst_58 : f32 to vector<32x1xf32>
    %174 = tpu.concatenate %172, %173 in 1 : vector<32x255xf32>, vector<32x1xf32> -> vector<32x256xf32>
    %175 = vector.broadcast %3 : vector<1x256xf32> to vector<32x256xf32>
    %176 = arith.mulf %174, %175 : vector<32x256xf32>
    %177 = tpu.concatenate %136, %139, %147, %152, %127, %157, %165, %168, %176 in 0 : vector<32x256xf32>, vector<32x256xf32>, vector<32x256xf32>, vector<32x256xf32>, vector<32x256xf32>, vector<32x256xf32>, vector<32x256xf32>, vector<32x256xf32>, vector<32x256xf32> -> vector<288x256xf32>
    %cst_59 = arith.constant dense<0.000000e+00> : vector<32x256xf32>
    %178 = tpu.matmul %128, %177, %cst_59 {dimension_numbers = #tpu.dot_dimension_numbers<[1], [0], [0], [1], [0, 0, 1, 1], [], []>} : vector<32x288xf32>, vector<288x256xf32>, vector<32x256xf32> -> vector<32x256xf32>
    %c0_60 = arith.constant 0 : index
    %c0_61 = arith.constant 0 : index
    %179 = vector.load %arg7[%c0_60, %c0_61] : memref<32x1xf32, #tpu.memory_space<vmem>>, vector<32x1xf32>
    %180 = vector.broadcast %179 : vector<32x1xf32> to vector<32x256xf32>
    %181 = arith.addf %178, %180 : vector<32x256xf32>
    %182 = vector.extract_strided_slice %181 {offsets = [0, 0], sizes = [16, 256], strides = [1, 1]} : vector<32x256xf32> to vector<16x256xf32>
    %183 = vector.extract_strided_slice %181 {offsets = [16, 0], sizes = [16, 256], strides = [1, 1]} : vector<32x256xf32> to vector<16x256xf32>
    %cst_62 = arith.constant 0.000000e+00 : f32
    %184 = vector.broadcast %cst_62 : f32 to vector<16x256xf32>
    %185 = arith.subf %184, %183 : vector<16x256xf32>
    %186 = math.exp %185 : vector<16x256xf32>
    %cst_63 = arith.constant 1.000000e+00 : f32
    %187 = vector.broadcast %cst_63 : f32 to vector<16x256xf32>
    %188 = arith.addf %187, %186 : vector<16x256xf32>
    %cst_64 = arith.constant 1.000000e+00 : f32
    %189 = vector.broadcast %cst_64 : f32 to vector<16x256xf32>
    %190 = arith.divf %189, %188 : vector<16x256xf32>
    %191 = tpu.concatenate %182, %190 in 0 : vector<16x256xf32>, vector<16x256xf32> -> vector<32x256xf32>
    %c0_65 = arith.constant 0 : index
    %c0_66 = arith.constant 0 : index
    %c0_67 = arith.constant 0 : index
    %192 = vector.load %arg10[%c0_65, %c0_66, %c0_67] : memref<1x32x256xf32, #tpu.memory_space<vmem>>, vector<1x32x256xf32>
    %193 = vector.shape_cast %192 : vector<1x32x256xf32> to vector<32x256xf32>
    %194 = vector.shape_cast %191 : vector<32x256xf32> to vector<1x32x256xf32>
    tpu.vector_store %arg10[%c0_65, %c0_66, %c0_67], %194 {strides = array<i32>} : memref<1x32x256xf32, #tpu.memory_space<vmem>>, vector<1x32x256xf32>,
    return
  }
  func.func @transform_0(%arg0: i32) -> (i32, i32, i32) {
    %c0_i32 = arith.constant 0 : i32
    %c0_i32_0 = arith.constant 0 : i32
    %c0_i32_1 = arith.constant 0 : i32
    return %arg0, %c0_i32, %c0_i32_0 : i32, i32, i32
  }
  func.func @transform_1(%arg0: i32) -> (i32, i32) {
    %c0_i32 = arith.constant 0 : i32
    %c0_i32_0 = arith.constant 0 : i32
    %c0_i32_1 = arith.constant 0 : i32
    return %c0_i32, %c0_i32_0 : i32, i32
  }
  func.func @transform_2(%arg0: i32) -> (i32, i32) {
    %c0_i32 = arith.constant 0 : i32
    %c0_i32_0 = arith.constant 0 : i32
    %c0_i32_1 = arith.constant 0 : i32
    return %c0_i32, %c0_i32_0 : i32, i32
  }
  func.func @transform_3(%arg0: i32) -> (i32, i32) {
    %c0_i32 = arith.constant 0 : i32
    %c0_i32_0 = arith.constant 0 : i32
    %c0_i32_1 = arith.constant 0 : i32
    return %c0_i32, %c0_i32_0 : i32, i32
  }
  func.func @transform_4(%arg0: i32) -> (i32, i32) {
    %c0_i32 = arith.constant 0 : i32
    %c0_i32_0 = arith.constant 0 : i32
    %c0_i32_1 = arith.constant 0 : i32
    return %c0_i32, %c0_i32_0 : i32, i32
  }
  func.func @transform_5(%arg0: i32) -> (i32, i32) {
    %c0_i32 = arith.constant 0 : i32
    %c0_i32_0 = arith.constant 0 : i32
    %c0_i32_1 = arith.constant 0 : i32
    return %c0_i32, %c0_i32_0 : i32, i32
  }
  func.func @transform_6(%arg0: i32) -> (i32, i32) {
    %c0_i32 = arith.constant 0 : i32
    %c0_i32_0 = arith.constant 0 : i32
    %c0_i32_1 = arith.constant 0 : i32
    return %c0_i32, %c0_i32_0 : i32, i32
  }
  func.func @transform_7(%arg0: i32) -> (i32, i32) {
    %c0_i32 = arith.constant 0 : i32
    %c0_i32_0 = arith.constant 0 : i32
    %c0_i32_1 = arith.constant 0 : i32
    return %c0_i32, %c0_i32_0 : i32, i32
  }
  func.func @transform_8(%arg0: i32) -> (i32, i32) {
    %c0_i32 = arith.constant 0 : i32
    %c0_i32_0 = arith.constant 0 : i32
    %c0_i32_1 = arith.constant 0 : i32
    return %c0_i32, %c0_i32_0 : i32, i32
  }
  func.func @transform_9(%arg0: i32) -> (i32, i32, i32) {
    %c0_i32 = arith.constant 0 : i32
    %c0_i32_0 = arith.constant 0 : i32
    %c0_i32_1 = arith.constant 0 : i32
    return %arg0, %c0_i32, %c0_i32_0 : i32, i32, i32
  }
}

</mosaic_0001>

<bundles_post_ra>
// kernel: tpu_custom_call.1
= control target key start
LH: loop header
LB: loop body
LE: loop exit
PB: predicated region body
PF: predicated region fallthrough
CT: control target
= control target key end

     0   :  { %14 = vsyncpa [#allocation3], 0  ;;  %s3064_s0 = inlined_call_operand.vmem [shape: f32[2,16,256], index: 0, kind: input, shape index: {}]   ;;  %s3065_s1 = inlined_call_operand.hbm [shape: f32[8,144], index: 1, kind: input, shape index: {}]   ;;  %s3066_s2 = inlined_call_operand.vmem [shape: f32[8,1], index: 2, kind: input, shape index: {}]   ;;  %s3067_s3 = inlined_call_operand.hbm [shape: f32[32,72], index: 3, kind: input, shape index: {}]   ;;  %s3068_s4 = inlined_call_operand.vmem [shape: f32[32,1], index: 4, kind: input, shape index: {}]   ;;  %s3069_s5 = inlined_call_operand.hbm [shape: f32[32,288], index: 5, kind: input, shape index: {}]   ;;  %s3070_s6 = inlined_call_operand.vmem [shape: f32[32,1], index: 6, kind: input, shape index: {}]   ;;  %s3071_s7 = inlined_call_operand.vmem [shape: f32[1,256], index: 7, kind: input, shape index: {}]   ;;  %s3072_s8 = inlined_call_operand.vmem [shape: f32[1,256], index: 8, kind: input, shape index: {}]   ;;  %s3073_s9 = inlined_call_operand.hbm [shape: f32[2,32,256], index: 9, kind: output, shape index: {}]  }
   0x1   :  { %15 = vsyncpa [#allocation6], 0 }
   0x2   :  { %16 = vsyncpa [#allocation4], 0 }
   0x3   :  { %18 = vsyncpa [#allocation4 + $0x1], 0  ;;  %s2177_s30 = smov 0   ;;  %s2179_s10 = smov 0  }
   0x4   :  { %s2181_s11 = smov 0   ;;  %s2183_s12 = smov 0  }
   0x5 LB: > { %3082 = sst [smem:[#allocation12_spill]] %s2097_s30  ;;  %s2198_s13 = sadd.s32 4294967295, %s2109_s12   ;;  %s2109_s12 = sphi %s2183_s12, %s3107_s12   ;;  %s2105_s11 = sphi %s2181_s11, %s3109_s11   ;;  %s2101_s10 = sphi %s2179_s10, %s3111_s10   ;;  %s2097_s30 = sphi %s2177_s30, %s3110_s30  }
   0x6   : > { %3083 = sst [smem:[#allocation13_spill]] %s2105_s11  ;;  %s1613_s14 = sadd.s32 4294967294, %s2109_s12  }
   0x7   : > { %s2202_s15 = sadd.s32 1, %s2109_s12   ;;  %s225_s16 = sadd.s32 1, %s2105_s11 }
   0x8   : > { %3084 = sst [smem:[#allocation14_spill]] %s2202_s15  ;;  %s222_s17 = ssub.s32 %s2109_s12, %s2202_s15 }
   0x9   : > { %p235_p0 = scmp.ne.s32.totalorder %s2105_s11, %s2101_s10  ;;  %p223_p1 = scmp.eq.s32.totalorder %s222_s17, 0 }
   0xa   : > { %p236_p2 = scmp.eq.s32.totalorder %s2198_s13, 1  ;;  %p241_p3 = scmp.ne.s32.totalorder %s2101_s10, %s2097_s30 }
   0xb   : > { %p242_p4 = scmp.eq.s32.totalorder %s1613_s14, 1  ;;  %p1614_p7 = scmp.ge.s32.totalorder %s2109_s12, 1 }
   0xc   : > { %s2213_s18 = scalar_select %p223_p1, %s2105_s11, %s225_s16  }
   0xd   : > { %p2215_p5 = por %p236_p2, %p235_p0  ;;  %p2219_p6 = por %p242_p4, %p241_p3 }
   0xe   : > { %3085 = sst [smem:[#allocation15_spill]] %s2213_s18  ;;  %p249_p8 = scmp.lt.s32.totalorder %s2109_s12, 3 }
   0xf   : > { %s3086_s19 = scalar_select %p2215_p5, 1, 0 }
  0x10   : > { %s3087_s20 = scalar_select %p2219_p6, 1, 0 }
  0x11   : > { %p3074_p9 = scmp.eq.s32.totalorder %s2198_s13, 0  ;;  %p2226_p10 = pnand %p1614_p7, %p249_p8 }
  0x12   : > { %3088 = sst [smem:[#allocation16_spill]] %s3087_s20  ;;  %s2111_s22 = smov [#allocation5]  }
  0x13   : > { %s3089_s21 = scalar_select %p2226_p10, 1, 0 }
  0x14   : > { %s275_s23 = sshll.u32 %s2111_s22, 4  ;;  %p1829_p11 = pneg %p2226_p10  ;;  %s2232_s23 = int_to_ptr.vmem [resolvable:$true] %s275_s23 }
  0x15   : > { %s2112_s25 = smov [#allocation2]   ;;  %s2113_s27 = smov [#allocation7]  }
  0x16   : > { %p2236_p12 = pnand %p3074_p9, %p1829_p11  ;;  %s262_s26 = sshll.u32 %s2112_s25, 4  ;;  %s2240_s26 = int_to_ptr.vmem [resolvable:$true] %s262_s26 }
  0x17   : > { %s2242_s28 = sshll.u32 %s2113_s27, 4  ;;  %s1955_s16 = scalar_lea.hbm %s3067_s3, 512  ;;  %s292_s28 = int_to_ptr.vmem [resolvable:$true] %s2242_s28 }
  0x18   : > { %p1956_p13 = scmp.ne.s32.totalorder %s3067_s3, %s1955_s16  ;;  %p2252_p0 = pneg %p2236_p12 }
  0x19   : > { %p1962_p3 = scmp.lt.u32.totalorder %s1955_s16, %s3067_s3 }
  0x1a   : > { %p1958_p1 = pnand %p2252_p0, %p1956_p13 }
  0x1c   : > { %p1959_p2 = pneg %p1958_p1 }
  0x1e   : > { %p1964_p4 = pnand %p1962_p3, %p1959_p2 }
  0x20   : > { %1967 = shalt.err (!%p1964_p4)
}
  0x21   : > { %s1968_s29 = scalar_lea.vmem %s2232_s23, 512  ;;  %p1976_p9 = scmp.lt.s32.totalorder %s2232_s23, %s2232_s23 }
  0x22   : > { %p1969_p7 = scmp.ne.s32.totalorder %s2232_s23, %s1968_s29  ;;  %p1977_p6 = scmp.lt.s32.totalorder %s1968_s29, %s1968_s29 }
  0x24   : > { %p1971_p8 = pnand %p1969_p7, %p2252_p0  ;;  %p1978_p13 = por %p1977_p6, %p1976_p9 }
  0x26   : > { %p1972_p11 = pneg %p1971_p8 }
  0x28   : > { %p1979_p1 = pnand %p1978_p13, %p1972_p11 }
  0x2a   : > { %1982 = shalt.err (!%p1979_p1)
}
  0x2b   : > { %s2114_s14 = smov 128   ;;  %s2115_s16 = smov 8  }
  0x2c   : > { %1835 = dma.hbm_to_vmem [thread:$0]  (!%p2236_p12), %s3067_s3, 512, %s2232_s23, [#allocation6], %s2114_s14, %s2114_s14, %s2115_s16  }
  0x2d   : > { %s1983_s11 = scalar_lea.hbm %s3065_s1, 256 }
  0x2e   : > { %p1984_p6 = scmp.ne.s32.totalorder %s3065_s1, %s1983_s11  ;;  %p1990_p3 = scmp.lt.u32.totalorder %s1983_s11, %s3065_s1 }
  0x30   : > { %p1986_p9 = pnand %p1984_p6, %p2252_p0 }
  0x32   : > { %p1987_p2 = pneg %p1986_p9 }
  0x34   : > { %p1992_p4 = pnand %p1990_p3, %p1987_p2 }
  0x36   : > { %1995 = shalt.err (!%p1992_p4)
}
  0x37   : > { %s1996_s23 = scalar_lea.vmem %s2240_s26, 256  ;;  %p2004_p13 = scmp.lt.s32.totalorder %s2240_s26, %s2240_s26 }
  0x38   : > { %p1997_p7 = scmp.ne.s32.totalorder %s2240_s26, %s1996_s23  ;;  %p2005_p1 = scmp.lt.s32.totalorder %s1996_s23, %s1996_s23 }
  0x3a   : > { %p1999_p8 = pnand %p1997_p7, %p2252_p0  ;;  %p2006_p6 = por %p2005_p1, %p2004_p13 }
  0x3c   : > { %p2000_p11 = pneg %p1999_p8 }
  0x3e   : > { %p2007_p9 = pnand %p2006_p6, %p2000_p11 }
  0x40   : > { %2010 = shalt.err (!%p2007_p9)
}
  0x41   : > { %1832 = dma.hbm_to_vmem [thread:$0]  (!%p2236_p12), %s3065_s1, 256, %s2240_s26, [#allocation3]  }
  0x42   : > { %s2011_s14 = scalar_lea.hbm %s3069_s5, 1536 }
  0x43   : > { %p2012_p2 = scmp.ne.s32.totalorder %s3069_s5, %s2011_s14  ;;  %p2018_p7 = scmp.lt.u32.totalorder %s2011_s14, %s3069_s5 }
  0x45   : > { %p2014_p3 = pnand %p2012_p2, %p2252_p0 }
  0x47   : > { %p2015_p4 = pneg %p2014_p3 }
  0x49   : > { %p2020_p8 = pnand %p2018_p7, %p2015_p4 }
  0x4b   : > { %2023 = shalt.err (!%p2020_p8)
}
  0x4c   : > { %s2024_s27 = scalar_lea.vmem %s292_s28, 1536  ;;  %p2032_p6 = scmp.lt.s32.totalorder %s292_s28, %s292_s28 }
  0x4d   : > { %p2025_p11 = scmp.ne.s32.totalorder %s292_s28, %s2024_s27  ;;  %p2033_p9 = scmp.lt.s32.totalorder %s2024_s27, %s2024_s27 }
  0x4f   : > { %p2027_p13 = pnand %p2025_p11, %p2252_p0  ;;  %p2034_p5 = por %p2033_p9, %p2032_p6 }
  0x51   : > { %p2028_p1 = pneg %p2027_p13 }
  0x53   : > { %p2035_p10 = pnand %p2034_p5, %p2028_p1 }
  0x55   : > { %2038 = shalt.err (!%p2035_p10)
}
  0x56   : > { %s2116_s26 = smov 384   ;;  %s2117_s29 = smov 24  }
  0x57   : > { %1838 = dma.hbm_to_vmem [thread:$0]  (!%p2236_p12), %s3069_s5, 1536, %s292_s28, [#allocation6], %s2116_s26, %s2116_s26, %s2117_s29  }
  0x58   : > { %p3092_p2 = scmp.ne.s32.totalorder %s3089_s21, 0 }
  0x59   : > { %p3093_p3 = scmp.eq.s32.totalorder (!%p3092_p2), %s2198_s13, 0 }
  0x5a   : > { %324 = sbr.rel (%p3092_p2) target bundleno = 1738 (0x6ca), region = 56 }
  0x61   : > { %2084 = dma.done.wait (%p3093_p3), [#allocation3], 256   ;;  %p3094_p0 = pmov %p3093_p3 }
  0x63   : > { %2086 = vsyncadd (%p3094_p0), [#allocation3], 4294967040  ;;  %p3095_p5 = pmov %p3094_p0 }
  0x64   : > { %p3096_p10 = pmov %p3094_p0 }
  0x65   : > { %2088 = dma.done.wait (%p3095_p5), [#allocation6], 2048  }
  0x66   : > { %2090 = vsyncadd (%p3096_p10), [#allocation6], 4294965248  ;;  %p368_p4 = scmp.lt.s32.totalorder %s2198_s13, 1  ;;  %s2118_s15 = smov 16   ;;  %vm393_vm0 = vcmask 130048   ;;  %vm516_vm1 = vcmask 916480   ;;  %v422_v28 = vlaneseq }
  0x67   : > { %s2119_s20 = smov 112   ;;  %s2120_s14 = smov 1   ;;  %v380_v22 = vld [vmem:[#allocation2 + $0x8] sm:$0xff]  ;;  %v2122_v23 = vmov 0   ;;  %v567_v24 = vld [vmem:[%s3066_s2] sm:$0xff]  ;;  %vm412_vm2 = vcmask 7168   ;;  %vm2457_vm4 = vmneg %vm393_vm0 }
  0x68   : > { %s369_s18 = scalar_select %p368_p4, %s2198_s13, 1  ;;  %1632 = vmatprep.mubr.msk.f32.mxu0 %vm393_vm0, %v380_v22  ;;  %1897 = vset.pattern.permute.xlu0 %v2122_v23  ;;  %v423_v29 = vshrl.u32 %v422_v28, 7  ;;  %v377_v33 = vld [vmem:[%s3071_s7] sm:$0x3]  ;;  %vm444_vm3 = vcmask 1039360   ;;  %vm2476_vm5 = vmpackc.low %vm2457_vm4, %vm2457_vm4  ;;  %vm2124_vm7 = vmmov 1  }
  0x69   : > { %s2121_s16 = smov 127   ;;  %1898 = vset.pattern.permute.xlu1 %v2122_v23  ;;  %v378_v45 = vld [vmem:[%s3072_s8] sm:$0x3]  ;;  %vm2515_vm6 = vmpackc.low %vm516_vm1, %vm516_vm1  ;;  %vm769_vm10 = vcmask 588800   ;;  %vm1283_vm11 = vcmask 261120   ;;  %s1662_s28 = sshll.u32 %s2198_s13, 10 }
  0x6a   : > { %s1661_s24 = sshll.u32 %s369_s18, 5  ;;  %v424_v32 = vsub.s32 0, %v423_v29  ;;  %v428_v34 = vsub.s32 1, %v423_v29  ;;  %vm1704_vm8 = vmpackc.low %vm2457_vm4, %vm2124_vm7  ;;  %s3016_s17 = scalar_lea.hbm %s3073_s9, %s1662_s28 }
  0x6b   : > { %s372_s11 = scalar_lea.vmem %s3064_s0, %s1661_s24  ;;  %vm1715_vm9 = vmpackc.low %vm516_vm1, %vm2124_vm7  ;;  %p3103_p7 = scmp.ne.s32.totalorder %s3086_s19, 0 }
  0x6c   : > { %v2330_v0 = vld [vmem:[%s372_s11 + $0x10] sm:$0xff]  ;;  %v2332_v1 = vld [vmem:[%s372_s11] sm:$0xff]  ;;  %v2338_v2 = vld [vmem:[%s372_s11 + $0x18] sm:$0xff]  ;;  %v2438_v38 = vrot.slane %v377_v33, %v424_v32  ;;  %v2441_v40 = vrot.slane %v377_v33, %v428_v34  ;;  %v2452_v50 = vrot.slane %v378_v45, %v428_v34  ;;  %v2463_v60 = vrot.slane %v378_v45, %v424_v32  ;;  %s2125_s13 = smov [#allocation8]  }
  0x6d   : > { %389 = vrot.lane.b32.xlu1 %v2330_v0, %s2118_s15  ;;  %385 = vrot.lane.b32.xlu0 %v2332_v1, %s2118_s15  ;;  %v2340_v3 = vld [vmem:[%s372_s11 + $0x8] sm:$0xff]  ;;  %s2043_s22 = sshll.u32 %s2125_s13, 4  ;;  %s2044_s22 = int_to_ptr.vmem [resolvable:$false] %s2043_s22 }
  0x6e   : > { %s2045_s25 = scalar_lea.vmem %s2044_s22, 2048 }
  0x71   : > { %391 = vrot.lane.b32.xlu1 %v2338_v2, %s2118_s15  ;;  %387 = vrot.lane.b32.xlu0 %v2340_v3, %s2118_s15 }
  0x75   : > { %510 = vrot.lane.b32.xlu1 %v2340_v3, %s2119_s20  ;;  %508 = vrot.lane.b32.xlu0 %v2332_v1, %s2119_s20 }
  0x79   : > { %514 = vrot.lane.b32.xlu1 %v2338_v2, %s2119_s20  ;;  %512 = vrot.lane.b32.xlu0 %v2330_v0, %s2119_s20 }
  0x7d   : > { %470 = vrot.lane.b32.xlu1 %v2340_v3, %s2120_s14  ;;  %468 = vrot.lane.b32.xlu0 %v2332_v1, %s2120_s14 }
  0x81   : > { %474 = vrot.lane.b32.xlu1 %v2338_v2, %s2120_s14  ;;  %472 = vrot.lane.b32.xlu0 %v2330_v0, %s2120_s14 }
  0xdf   : > { %v2362_v4 = vpop.permute.xlu1 %389  ;;  %v2364_v5 = vpop.permute.xlu0 %385 }
  0xe0   : > { %v400_v6 = vsel %vm393_vm0, 0.0, %v2364_v5  ;;  %v401_v7 = vsel %vm393_vm0, 0.0, %v2362_v4  ;;  %v1669_v63 = vpack.c.bf16 %v2362_v4, %v2364_v5 }
  0xe1   : > { %404 = vrot.lane.b32.xlu0 %v400_v6, %s2120_s14 }
  0xe3   : > { %v392_v8 = vpop.permute.xlu1 %391  ;;  %v388_v9 = vpop.permute.xlu0 %387 }
  0xe4   : > { %v2373_v10 = vsel %vm393_vm0, %v2364_v5, %v388_v9  ;;  %v2377_v11 = vsel %vm393_vm0, %v2362_v4, %v392_v8 }
  0xe5   : > { %408 = vrot.lane.b32.xlu0 %v401_v7, %s2120_s14  ;;  %406 = vrot.lane.b32.xlu1 %v2373_v10, %s2120_s14  ;;  %v1667_v12 = vpack.c.bf16 %v2377_v11, %v2373_v10 }
  0xe7   : > { %v2384_v13 = vpop.permute.xlu1 %510  ;;  %v509_v14 = vpop.permute.xlu0 %508 }
  0xe8   : > { %v2394_v17 = vsel %vm516_vm1, %v509_v14, %v2384_v13  ;;  %v523_v20 = vsel %vm516_vm1, %v2384_v13, 0.0 }
  0xe9   : > { %438 = vrot.lane.b32.xlu0 %v2373_v10, %s2121_s16  ;;  %410 = vrot.lane.b32.xlu1 %v2377_v11, %s2120_s14 }
  0xeb   : > { %v2390_v15 = vpop.permute.xlu1 %514  ;;  %v513_v16 = vpop.permute.xlu0 %512 }
  0xec   : > { %v2398_v18 = vsel %vm516_vm1, %v513_v16, %v2390_v15  ;;  %v524_v21 = vsel %vm516_vm1, %v2390_v15, 0.0 }
  0xed   : > { %436 = vrot.lane.b32.xlu0 %v400_v6, %s2121_s16  ;;  %442 = vrot.lane.b32.xlu1 %v2377_v11, %s2121_s16  ;;  %v1695_v19 = vpack.c.bf16 %v2398_v18, %v2394_v17 }
  0xef   : > { %v469_v25 = vpop.permute.xlu0 %468  ;;  %v471_v26 = vpop.permute.xlu1 %470 }
  0xf0   : > { %v476_v58 = vsel %vm412_vm2, %v469_v25, %v471_v26  ;;  %v482_v14 = vsel %vm412_vm2, 0.0, %v469_v25 }
  0xf1   : > { %490 = vrot.lane.b32.xlu0 %v2340_v3, %s2121_s16  ;;  %440 = vrot.lane.b32.xlu1 %v401_v7, %s2121_s16  ;;  %v485_v16 = vmul.f32 %v476_v58, %v2441_v40 }
  0xf3   : > { %v473_v27 = vpop.permute.xlu0 %472  ;;  %v475_v30 = vpop.permute.xlu1 %474 }
  0xf4   : > { %v477_v61 = vsel %vm412_vm2, %v473_v27, %v475_v30  ;;  %v483_v4 = vsel %vm412_vm2, 0.0, %v473_v27 }
  0xf5   : > { %488 = vrot.lane.b32.xlu0 %v2332_v1, %s2121_s16  ;;  %494 = vrot.lane.b32.xlu1 %v2338_v2, %s2121_s16  ;;  %v486_v25 = vmul.f32 %v483_v4, %v2438_v38 }
  0xf9   : > { %492 = vrot.lane.b32.xlu1 %v2330_v0, %s2121_s16  ;;  %527 = vrot.lane.b32.xlu0 %v2394_v17, %s2120_s14 }
  0xfd   : > { %529 = vrot.lane.b32.xlu1 %v523_v20, %s2120_s14  ;;  %531 = vrot.lane.b32.xlu0 %v2398_v18, %s2120_s14 }
 0x101   : > { %533 = vrot.lane.b32.xlu1 %v524_v21, %s2120_s14  ;;  %549 = vrot.lane.b32.xlu0 %v523_v20, %s2121_s16  ;;  %v487_v20 = vmul.f32 %v477_v61, %v2441_v40 }
 0x103   : > { %v1676_v26 = vpack.c.bf16 %v487_v20, %v485_v16 }
 0x105   : > { %553 = vrot.lane.b32.xlu1 %v524_v21, %s2121_s16  ;;  %547 = vrot.lane.b32.xlu0 %v2394_v17, %s2121_s16 }
 0x109   : > { %551 = vrot.lane.b32.xlu1 %v2398_v18, %s2121_s16  ;;  %570 = vperm.xlu0 %1897, %v567_v24   ;;  %v484_v24 = vmul.f32 %v482_v14, %v2438_v38 }
 0x10b   : > { %v1678_v32 = vpack.c.bf16 %v486_v25, %v484_v24 }
 0x153   : > { %v405_v31 = vpop.permute.xlu0 %404 }
 0x154   : > { %v419_v41 = vsel %vm412_vm2, 0.0, %v405_v31 }
 0x155   : > { %v432_v49 = vmul.f32 %v2438_v38, %v419_v41 }
 0x157   : > { %v407_v35 = vpop.permute.xlu1 %406  ;;  %v409_v36 = vpop.permute.xlu0 %408 }
 0x158   : > { %v420_v37 = vsel %vm412_vm2, 0.0, %v409_v36  ;;  %v413_v39 = vsel %vm412_vm2, %v405_v31, %v407_v35  ;;  %v1680_v31 = vpack.c.bf16 %v2338_v2, %v2340_v3 }
 0x159   : > { %v434_v46 = vmul.f32 %v2438_v38, %v420_v37  ;;  %v433_v47 = vmul.f32 %v2441_v40, %v413_v39 }
 0x15b   : > { %v411_v42 = vpop.permute.xlu1 %410  ;;  %v439_v43 = vpop.permute.xlu0 %438  ;;  %v1665_v56 = vpack.c.bf16 %v434_v46, %v432_v49 }
 0x15c   : > { %v414_v44 = vsel %vm412_vm2, %v409_v36, %v411_v42  ;;  %v451_v54 = vsel %vm444_vm3, %v439_v43, 0.0  ;;  %v1682_v36 = vpack.c.bf16 %v2330_v0, %v2332_v1 }
 0x15d   : > { %v435_v48 = vmul.f32 %v2441_v40, %v414_v44  ;;  %v465_v6 = vmul.f32 %v2452_v50, %v451_v54 }
 0x15f   : > { %v443_v51 = vpop.permute.xlu1 %442  ;;  %v437_v52 = vpop.permute.xlu0 %436  ;;  %v1663_v53 = vpack.c.bf16 %v435_v48, %v433_v47 }
 0x160   : > { %v452_v55 = vsel %vm444_vm3, %v443_v51, 0.0  ;;  %v445_v62 = vsel %vm444_vm3, %v437_v52, %v439_v43 }
 0x161   : > { %v467_v59 = vmul.f32 %v2452_v50, %v452_v55  ;;  %1664 = vmatprep.subr.bf16.mxu0 %v1663_v53  ;;  %v464_v10 = vmul.f32 %v2463_v60, %v445_v62  ;;  %v1692_v62 = vpack.c.bf16 %v2390_v15, %v2384_v13  ;;  %v379_v15 = vld [vmem:[#allocation2] sm:$0xff] }
 0x162   : > { %1666 = vmatpush1.bf16.msra.mxu0 %v1665_v56 }
 0x163   : > { %v441_v7 = vpop.permute.xlu1 %440  ;;  %1668 = vmatprep.subr.bf16.mxu0 %v1667_v12  ;;  %v491_v8 = vpop.permute.xlu0 %490  ;;  %v1672_v12 = vpack.c.bf16 %v467_v59, %v465_v6 }
 0x164   : > { %v446_v5 = vsel %vm444_vm3, %v441_v7, %v443_v51  ;;  %v502_v27 = vsel %vm444_vm3, %v491_v8, 0.0 }
 0x165   : > { %v466_v11 = vmul.f32 %v2463_v60, %v446_v5  ;;  %v505_v33 = vmul.f32 %v502_v27, %v2452_v50 }
 0x166   : > { %1671 = vmatpush1.bf16.msk.msra.mxu0 %vm2476_vm5, %v1669_v63 }
 0x167   : > { %v495_v21 = vpop.permute.xlu1 %494  ;;  %1673 = vmatprep.subr.bf16.mxu0 %v1672_v12  ;;  %v489_v22 = vpop.permute.xlu0 %488  ;;  %v1674_v23 = vpack.c.bf16 %v466_v11, %v464_v10 }
 0x168   : > { %v503_v28 = vsel %vm444_vm3, %v495_v21, 0.0  ;;  %v496_v37 = vsel %vm444_vm3, %v489_v22, %v491_v8 }
 0x169   : > { %v507_v34 = vmul.f32 %v503_v28, %v2452_v50  ;;  %v504_v44 = vmul.f32 %v496_v37, %v2463_v60 }
 0x16a   : > { %1675 = vmatpush1.bf16.msra.mxu0 %v1674_v23 }
 0x16b   : > { %v493_v29 = vpop.permute.xlu1 %492  ;;  %1677 = vmatprep.subr.bf16.mxu0 %v1676_v26  ;;  %v528_v30 = vpop.permute.xlu0 %527  ;;  %v1684_v43 = vpack.c.bf16 %v507_v34, %v505_v33 }
 0x16c   : > { %v497_v35 = vsel %vm444_vm3, %v493_v29, %v495_v21  ;;  %v541_v2 = vsel %vm412_vm2, 0.0, %v528_v30 }
 0x16d   : > { %v506_v42 = vmul.f32 %v497_v35, %v2463_v60  ;;  %v543_v0 = vmul.f32 %v541_v2, %v2438_v38  ;;  %v747_v2 = vld [vmem:[%s3068_s4 + $0x10] sm:$0xff] }
 0x16e   : > { %1679 = vmatpush1.bf16.msra.mxu0 %v1678_v32 }
 0x16f   : > { %v530_v39 = vpop.permute.xlu1 %529  ;;  %v532_v41 = vpop.permute.xlu0 %531  ;;  %1681 = vmatprep.subr.bf16.mxu0 %v1680_v31  ;;  %v1686_v49 = vpack.c.bf16 %v506_v42, %v504_v44  ;;  %v745_v42 = vld [vmem:[%s3068_s4] sm:$0xff] }
 0x170   : > { %v542_v3 = vsel %vm412_vm2, 0.0, %v532_v41  ;;  %v535_v45 = vsel %vm412_vm2, %v528_v30, %v530_v39  ;;  %v2123_v39 = vmov 0.0  }
 0x171   : > { %v545_v1 = vmul.f32 %v542_v3, %v2438_v38  ;;  %v544_v51 = vmul.f32 %v535_v45, %v2441_v40  ;;  %v746_v3 = vld [vmem:[%s3068_s4 + $0x8] sm:$0xff] }
 0x172   : > { %1683 = vmatpush1.bf16.msra.mxu0 %v1682_v36 }
 0x173   : > { %v534_v46 = vpop.permute.xlu1 %533  ;;  %v550_v47 = vpop.permute.xlu0 %549  ;;  %1685 = vmatprep.subr.bf16.mxu0 %v1684_v43  ;;  %v1690_v59 = vpack.c.bf16 %v545_v1, %v543_v0  ;;  %v748_v43 = vld [vmem:[%s3068_s4 + $0x18] sm:$0xff] }
 0x174   : > { %v536_v48 = vsel %vm412_vm2, %v532_v41, %v534_v46  ;;  %v561_v56 = vsel %vm444_vm3, %v550_v47, 0.0 }
 0x175   : > { %v546_v52 = vmul.f32 %v536_v48, %v2441_v40  ;;  %v564_v7 = vmul.f32 %v561_v56, %v2452_v50 }
 0x176   : > { %1687 = vmatpush1.bf16.msra.mxu0 %v1686_v49 }
 0x177   : > { %v554_v53 = vpop.permute.xlu1 %553  ;;  %v548_v54 = vpop.permute.xlu0 %547  ;;  %v1688_v55 = vpack.c.bf16 %v546_v52, %v544_v51 }
 0x178   : > { %v562_v58 = vsel %vm444_vm3, %v554_v53, 0.0  ;;  %v555_v6 = vsel %vm444_vm3, %v548_v54, %v550_v47 }
 0x179   : > { %v566_v63 = vmul.f32 %v562_v58, %v2452_v50  ;;  %1689 = vmatprep.subr.bf16.mxu0 %v1688_v55  ;;  %v563_v16 = vmul.f32 %v555_v6, %v2463_v60 }
 0x17a   : > { %1691 = vmatpush1.bf16.msra.mxu0 %v1690_v59 }
 0x17b   : > { %v552_v8 = vpop.permute.xlu1 %551  ;;  %1694 = vmatprep.subr.msk.bf16.mxu0 %vm2515_vm6, %v1692_v62  ;;  %v1697_v5 = vpack.c.bf16 %v566_v63, %v564_v7 }
 0x17c   : > { %v556_v14 = vsel %vm444_vm3, %v552_v8, %v554_v53 }
 0x17d   : > { %v565_v4 = vmul.f32 %v556_v14, %v2463_v60 }
 0x17e   : > { %1696 = vmatpush1.bf16.msra.mxu0 %v1695_v19 }
 0x17f   : > { %1698 = vmatprep.subr.bf16.mxu0 %v1697_v5  ;;  %v1699_v13 = vpack.c.bf16 %v565_v4, %v563_v16 }
 0x182   : > { %1700 = vmatpush1.bf16.msra.mxu0 %v1699_v13 }
 0x185   : > { %641 = vmatmul.mubr.f32.vlgmr.msra.gmra.mrb[0].mxu0 %v379_v15 }
 0x186   : > { %846 = vmatprep.mubr.f32.mxu0 %v2123_v39 }
 0x188   : > { %v571_v20 = vpop.permute.xlu0 %570 }
 0x258   : > { %v642_v10 = vpop.f32.mrb[0].mxu0 }
 0x259   : > { %v643_v11 = vadd.f32 %v642_v10, %v571_v20  ;;  %v644_v12 = vpop.f32.mrb[1].mxu0 }
 0x25a   : > { %v645_v21 = vadd.f32 %v644_v12, %v571_v20 }
 0x25b   : > { %v647_v22 = vsub.f32 0.0, %v643_v11 }
 0x25c   : > { %v648_v23 = vsub.f32 0.0, %v645_v21 }
 0x25d   : > { %v649_v24 = vmul.f32 1.442695, %v647_v22 }
 0x25e   : > { %v651_v25 = vmul.f32 1.442695, %v648_v23 }
 0x25f   : > { %1899 = vpow2.f32 %v649_v24 }
 0x260   : > { %1901 = vpow2.f32 %v651_v25 }
 0x269   : > { %v1900_v26 = vpop.eup %1899 }
 0x26a   : > { %v1902_v27 = vpop.eup %1901  ;;  %v653_v17 = vadd.f32 1.0, %v1900_v26 }
 0x26b   : > { %v654_v18 = vadd.f32 1.0, %v1902_v27 }
 0x26c   : > { %1903 = vrcp.f32 %v653_v17 }
 0x26d   : > { %1905 = vrcp.f32 %v654_v18 }
 0x276   : > { %v1904_v19 = vpop.eup %1903 }
 0x277   : > { %v2532_v28 = vmul.f32 %v1904_v19, %v643_v11  ;;  %v1906_v29 = vpop.eup %1905 }
 0x278   : > { %v2538_v30 = vmul.f32 %v1906_v29, %v645_v21 }
 0x279   : > { %716 = vrot.lane.b32.xlu0 %v2532_v28, %s2119_s20  ;;  %667 = vrot.lane.b32.xlu1 %v2532_v28, %s2118_s15 }
 0x27d   : > { %698 = vrot.lane.b32.xlu0 %v2538_v30, %s2120_s14  ;;  %669 = vrot.lane.b32.xlu1 %v2538_v30, %s2118_s15 }
 0x281   : > { %718 = vrot.lane.b32.xlu1 %v2538_v30, %s2119_s20 }
 0x285   : > { %696 = vrot.lane.b32.xlu1 %v2532_v28, %s2120_s14 }
 0x2eb   : > { %v668_v31 = vpop.permute.xlu1 %667  ;;  %v717_v36 = vpop.permute.xlu0 %716 }
 0x2ec   : > { %v674_v32 = vsel %vm393_vm0, 0.0, %v668_v31 }
 0x2ed   : > { %676 = vrot.lane.b32.xlu0 %v674_v32, %s2120_s14 }
 0x2ef   : > { %v670_v33 = vpop.permute.xlu1 %669  ;;  %v699_v44 = vpop.permute.xlu0 %698 }
 0x2f0   : > { %v671_v34 = vsel %vm393_vm0, %v668_v31, %v670_v33  ;;  %v664_v33 = vld [vmem:[#allocation5 + $0x18] sm:$0xff] }
 0x2f1   : > { %688 = vrot.lane.b32.xlu0 %v671_v34, %s2121_s16  ;;  %678 = vrot.lane.b32.xlu1 %v671_v34, %s2120_s14 }
 0x2f3   : > { %v2553_v35 = vpop.permute.xlu1 %718 }
 0x2f4   : > { %v2560_v37 = vsel %vm516_vm1, %v717_v36, %v2553_v35  ;;  %v723_v41 = vsel %vm516_vm1, %v2553_v35, 0.0 }
 0x2f5   : > { %708 = vrot.lane.b32.xlu0 %v2538_v30, %s2121_s16  ;;  %686 = vrot.lane.b32.xlu1 %v674_v32, %s2121_s16  ;;  %v663_v32 = vld [vmem:[#allocation5 + $0x10] sm:$0xff] }
 0x2f7   : > { %v697_v45 = vpop.permute.xlu1 %696 }
 0x2f8   : > { %v700_v48 = vsel %vm412_vm2, %v697_v45, %v699_v44  ;;  %v703_v55 = vsel %vm412_vm2, 0.0, %v697_v45 }
 0x2f9   : > { %706 = vrot.lane.b32.xlu1 %v2532_v28, %s2121_s16  ;;  %725 = vrot.lane.b32.xlu0 %v2560_v37, %s2120_s14  ;;  %v705_v56 = vmul.f32 %v700_v48, %v2441_v40  ;;  %v704_v8 = vmul.f32 %v703_v55, %v2438_v38 }
 0x2fd   : > { %727 = vrot.lane.b32.xlu1 %v723_v41, %s2120_s14  ;;  %737 = vrot.lane.b32.xlu0 %v723_v41, %s2121_s16 }
 0x301   : > { %735 = vrot.lane.b32.xlu1 %v2560_v37, %s2121_s16  ;;  %751 = vperm.xlu0 %1897, %v745_v42  }
 0x305   : > { %761 = vperm.xlu0 %1897, %v747_v2   ;;  %756 = vperm.xlu1 %1898, %v746_v3  }
 0x309   : > { %766 = vperm.xlu1 %1898, %v748_v43  }
 0x35f   : > { %v677_v46 = vpop.permute.xlu0 %676 }
 0x360   : > { %v683_v47 = vsel %vm412_vm2, 0.0, %v677_v46 }
 0x361   : > { %v684_v49 = vmul.f32 %v683_v47, %v2438_v38 }
 0x363   : > { %v689_v0 = vpop.permute.xlu0 %688  ;;  %v679_v1 = vpop.permute.xlu1 %678  ;;  %v1703_v63 = vpack.c.bf16 %v668_v31, %v684_v49  ;;  %v662_v31 = vld [vmem:[#allocation5 + $0x8] sm:$0xff] }
 0x364   : > { %v693_v51 = vsel %vm444_vm3, %v689_v0, 0.0  ;;  %v680_v52 = vsel %vm412_vm2, %v677_v46, %v679_v1 }
 0x365   : > { %v695_v53 = vmul.f32 %v693_v51, %v2452_v50  ;;  %v685_v54 = vmul.f32 %v680_v52, %v2441_v40 }
 0x367   : > { %v709_v58 = vpop.permute.xlu0 %708  ;;  %v687_v59 = vpop.permute.xlu1 %686  ;;  %v1701_v62 = vpack.c.bf16 %v671_v34, %v685_v54  ;;  %v1706_v4 = vpack.c.bf16 %v705_v56, %v695_v53 }
 0x368   : > { %v713_v6 = vsel %vm444_vm3, %v709_v58, 0.0  ;;  %v690_v7 = vsel %vm444_vm3, %v687_v59, %v689_v0 }
 0x369   : > { %v715_v14 = vmul.f32 %v713_v6, %v2452_v50  ;;  %v694_v16 = vmul.f32 %v690_v7, %v2463_v60  ;;  %1702 = vmatprep.subr.bf16.mxu0 %v1701_v62 }
 0x36a   : > { %1705 = vmatpush1.bf16.msk.msra.mxu0 %vm1704_vm8, %v1703_v63 }
 0x36b   : > { %v1708_v57 = vpack.c.bf16 %v704_v8, %v694_v16  ;;  %v726_v5 = vpop.permute.xlu0 %725  ;;  %1707 = vmatprep.subr.bf16.mxu0 %v1706_v4  ;;  %v707_v13 = vpop.permute.xlu1 %706  ;;  %v1710_v11 = vpack.c.bf16 %v715_v14, %v2538_v30  ;;  %v661_v30 = vld [vmem:[#allocation5] sm:$0xff] }
 0x36c   : > { %v710_v15 = vsel %vm444_vm3, %v707_v13, %v709_v58  ;;  %v732_v20 = vsel %vm412_vm2, 0.0, %v726_v5 }
 0x36d   : > { %v714_v10 = vmul.f32 %v710_v15, %v2463_v60  ;;  %v733_v23 = vmul.f32 %v732_v20, %v2438_v38 }
 0x36e   : > { %1709 = vmatpush1.bf16.msra.mxu0 %v1708_v57 }
 0x36f   : > { %v1712_v12 = vpack.c.bf16 %v714_v10, %v2532_v28  ;;  %v738_v21 = vpop.permute.xlu0 %737  ;;  %1711 = vmatprep.subr.bf16.mxu0 %v1710_v11  ;;  %v728_v22 = vpop.permute.xlu1 %727  ;;  %v1717_v18 = vpack.c.bf16 %v2560_v37, %v733_v23 }
 0x370   : > { %v729_v24 = vsel %vm412_vm2, %v726_v5, %v728_v22  ;;  %v742_v26 = vsel %vm444_vm3, %v738_v21, 0.0 }
 0x371   : > { %v734_v25 = vmul.f32 %v729_v24, %v2441_v40  ;;  %v744_v19 = vmul.f32 %v742_v26, %v2452_v50 }
 0x372   : > { %1713 = vmatpush1.bf16.msra.mxu0 %v1712_v12 }
 0x373   : > { %v1714_v27 = vpack.c.bf16 %v2553_v35, %v734_v25  ;;  %v736_v17 = vpop.permute.xlu1 %735 }
 0x374   : > { %v739_v28 = vsel %vm444_vm3, %v736_v17, %v738_v21 }
 0x375   : > { %1716 = vmatprep.subr.msk.bf16.mxu0 %vm1715_vm9, %v1714_v27  ;;  %v743_v29 = vmul.f32 %v739_v28, %v2463_v60 }
 0x376   : > { %1718 = vmatpush1.bf16.msra.mxu0 %v1717_v18 }
 0x377   : > { %798 = vmatprep.subr.mxu0 %v744_v19 }
 0x37a   : > { %799 = vmatpush1.msra.mxu0 %v743_v29 }
 0x37b   : > { %1636 = vmatmul.mubr.msk.f32.vlgmr.msra.gmra.mrb[2].mxu0 %vm769_vm10, %v661_v30 }
 0x37c   : > { %852 = vmatprep.mubr.f32.mxu0 %v2123_v39 }
 0x37f   : > { %1637 = vmatmul.mubr.msk.f32.gmra.mrb[4].mxu0 %vm769_vm10, %v662_v31 }
 0x380   : > { %858 = vmatprep.mubr.f32.mxu0 %v2123_v39  ;;  %v752_v34 = vpop.permute.xlu0 %751 }
 0x383   : > { %1638 = vmatmul.mubr.msk.f32.gmra.mrb[6].mxu0 %vm769_vm10, %v663_v32 }
 0x384   : > { %864 = vmatprep.mubr.f32.mxu0 %v2123_v39  ;;  %v757_v3 = vpop.permute.xlu1 %756  ;;  %v762_v48 = vpop.permute.xlu0 %761 }
 0x387   : > { %1639 = vmatmul.mubr.msk.f32.gmra.mrb[8].mxu0 %vm769_vm10, %v664_v33 }
 0x388   : > { %1449 = vmatprep.mubr.f32.mxu0 %v2123_v39  ;;  %v767_v59 = vpop.permute.xlu1 %766 }
 0x44e   : > { %v848_v35 = vpop.f32.mrb[2].mxu0 }
 0x44f   : > { %v2622_v36 = vadd.f32 %v848_v35, %v752_v34  ;;  %v850_v37 = vpop.f32.mrb[3].mxu0 }
 0x450   : > { %v2624_v41 = vadd.f32 %v850_v37, %v752_v34 }
 0x451   : > { %v871_v42 = vsub.f32 0.0, %v2622_v36 }
 0x452   : > { %v872_v2 = vsub.f32 0.0, %v2624_v41  ;;  %v854_v43 = vpop.f32.mrb[4].mxu0 }
 0x453   : > { %v879_v44 = vmul.f32 1.442695, %v871_v42  ;;  %v2628_v45 = vadd.f32 %v854_v43, %v757_v3  ;;  %v856_v46 = vpop.f32.mrb[5].mxu0 }
 0x454   : > { %v881_v47 = vmul.f32 1.442695, %v872_v2  ;;  %v2630_v0 = vadd.f32 %v856_v46, %v757_v3 }
 0x455   : > { %1907 = vpow2.f32 %v879_v44  ;;  %v873_v1 = vsub.f32 0.0, %v2628_v45 }
 0x456   : > { %1909 = vpow2.f32 %v881_v47  ;;  %v874_v49 = vsub.f32 0.0, %v2630_v0  ;;  %v860_v51 = vpop.f32.mrb[6].mxu0 }
 0x457   : > { %v883_v52 = vmul.f32 1.442695, %v873_v1  ;;  %v861_v53 = vadd.f32 %v860_v51, %v762_v48  ;;  %v862_v54 = vpop.f32.mrb[7].mxu0 }
 0x458   : > { %v885_v55 = vmul.f32 1.442695, %v874_v49  ;;  %v863_v56 = vadd.f32 %v862_v54, %v762_v48 }
 0x459   : > { %1911 = vpow2.f32 %v883_v52  ;;  %v875_v58 = vsub.f32 0.0, %v861_v53 }
 0x45a   : > { %1913 = vpow2.f32 %v885_v55  ;;  %v876_v62 = vsub.f32 0.0, %v863_v56  ;;  %v866_v63 = vpop.f32.mrb[8].mxu0 }
 0x45b   : > { %v887_v6 = vmul.f32 1.442695, %v875_v58  ;;  %v867_v7 = vadd.f32 %v866_v63, %v767_v59  ;;  %v868_v8 = vpop.f32.mrb[9].mxu0 }
 0x45c   : > { %v889_v14 = vmul.f32 1.442695, %v876_v62  ;;  %v869_v16 = vadd.f32 %v868_v8, %v767_v59 }
 0x45d   : > { %1915 = vpow2.f32 %v887_v6  ;;  %v877_v4 = vsub.f32 0.0, %v867_v7 }
 0x45e   : > { %1917 = vpow2.f32 %v889_v14  ;;  %v878_v57 = vsub.f32 0.0, %v869_v16 }
 0x45f   : > { %v1908_v5 = vpop.eup %1907  ;;  %v891_v13 = vmul.f32 1.442695, %v877_v4 }
 0x460   : > { %v1910_v15 = vpop.eup %1909  ;;  %v895_v20 = vadd.f32 1.0, %v1908_v5  ;;  %v893_v10 = vmul.f32 1.442695, %v878_v57 }
 0x461   : > { %v896_v11 = vadd.f32 1.0, %v1910_v15  ;;  %1919 = vpow2.f32 %v891_v13 }
 0x462   : > { %1921 = vrcp.f32 %v895_v20 }
 0x463   : > { %v1912_v12 = vpop.eup %1911  ;;  %1923 = vrcp.f32 %v896_v11 }
 0x464   : > { %v1914_v21 = vpop.eup %1913  ;;  %v897_v22 = vadd.f32 1.0, %v1912_v12  ;;  %1925 = vpow2.f32 %v893_v10 }
 0x465   : > { %v898_v23 = vadd.f32 1.0, %v1914_v21 }
 0x466   : > { %1927 = vrcp.f32 %v897_v22 }
 0x467   : > { %v1916_v24 = vpop.eup %1915  ;;  %1929 = vrcp.f32 %v898_v23 }
 0x468   : > { %v1918_v25 = vpop.eup %1917  ;;  %v899_v26 = vadd.f32 1.0, %v1916_v24 }
 0x469   : > { %v900_v27 = vadd.f32 1.0, %v1918_v25 }
 0x46a   : > { %1931 = vrcp.f32 %v899_v26 }
 0x46b   : > { %v1920_v17 = vpop.eup %1919  ;;  %1933 = vrcp.f32 %v900_v27 }
 0x46c   : > { %v1922_v18 = vpop.eup %1921  ;;  %v901_v19 = vadd.f32 1.0, %v1920_v17 }
 0x46d   : > { %v1924_v28 = vpop.eup %1923  ;;  %v2635_v29 = vmul.f32 %v1922_v18, %v2622_v36 }
 0x46e   : > { %v1926_v30 = vpop.eup %1925  ;;  %v2638_v31 = vmul.f32 %v1924_v28, %v2624_v41  ;;  %1935 = vrcp.f32 %v901_v19  ;;  %v928_v19 = vld [vmem:[#allocation7 + $0x8] sm:$0xff]  ;;  %v1261_v28 = vld [vmem:[%s3070_s6 + $0x10] sm:$0xff] }
 0x46f   : > { %v902_v32 = vadd.f32 1.0, %v1926_v30  ;;  %947 = vrot.lane.b32.xlu0 %v2635_v29, %s2118_s15  ;;  %1360 = vmatprep.mubr.f32.mxu1 %v928_v19  ;;  %v1262_v30 = vld [vmem:[%s3070_s6 + $0x18] sm:$0xff] }
 0x470   : > { %v1928_v33 = vpop.eup %1927  ;;  %949 = vrot.lane.b32.xlu1 %v2638_v31, %s2118_s15 }
 0x471   : > { %v1930_v34 = vpop.eup %1929  ;;  %v2645_v35 = vmul.f32 %v1928_v33, %v2628_v45  ;;  %1937 = vrcp.f32 %v902_v32  ;;  %v1259_v32 = vld [vmem:[%s3070_s6] sm:$0xff]  ;;  %v1260_v33 = vld [vmem:[%s3070_s6 + $0x8] sm:$0xff] }
 0x472   : > { %v2648_v36 = vmul.f32 %v1930_v34, %v2630_v0 }
 0x473   : > { %951 = vrot.lane.b32.xlu0 %v2645_v35, %s2118_s15 }
 0x474   : > { %v1932_v37 = vpop.eup %1931  ;;  %953 = vrot.lane.b32.xlu1 %v2648_v36, %s2118_s15 }
 0x475   : > { %v1934_v41 = vpop.eup %1933  ;;  %v2654_v42 = vmul.f32 %v1932_v37, %v861_v53 }
 0x476   : > { %v2656_v2 = vmul.f32 %v1934_v41, %v863_v56 }
 0x477   : > { %955 = vrot.lane.b32.xlu0 %v2654_v42, %s2118_s15 }
 0x478   : > { %v1936_v3 = vpop.eup %1935  ;;  %957 = vrot.lane.b32.xlu1 %v2656_v2, %s2118_s15 }
 0x479   : > { %v2662_v43 = vmul.f32 %v1936_v3, %v867_v7 }
 0x47b   : > { %v1938_v44 = vpop.eup %1937  ;;  %959 = vrot.lane.b32.xlu0 %v2662_v43, %s2118_s15 }
 0x47c   : > { %v2666_v45 = vmul.f32 %v1938_v44, %v869_v16 }
 0x47e   : > { %961 = vrot.lane.b32.xlu1 %v2666_v45, %s2118_s15 }
 0x47f   : > { %1143 = vrot.lane.b32.xlu0 %v2635_v29, %s2119_s20 }
 0x482   : > { %1145 = vrot.lane.b32.xlu1 %v2638_v31, %s2119_s20 }
 0x483   : > { %1147 = vrot.lane.b32.xlu0 %v2645_v35, %s2119_s20 }
 0x486   : > { %1149 = vrot.lane.b32.xlu1 %v2648_v36, %s2119_s20 }
 0x487   : > { %1151 = vrot.lane.b32.xlu0 %v2654_v42, %s2119_s20 }
 0x48a   : > { %1153 = vrot.lane.b32.xlu1 %v2656_v2, %s2119_s20 }
 0x48b   : > { %1155 = vrot.lane.b32.xlu0 %v2662_v43, %s2119_s20 }
 0x48e   : > { %1157 = vrot.lane.b32.xlu1 %v2666_v45, %s2119_s20 }
 0x4e1   : > { %v2686_v46 = vpop.permute.xlu0 %947 }
 0x4e2   : > { %v950_v47 = vpop.permute.xlu1 %949  ;;  %v975_v0 = vsel %vm393_vm0, 0.0, %v2686_v46 }
 0x4e3   : > { %983 = vrot.lane.b32.xlu0 %v975_v0, %s2120_s14  ;;  %v2693_v1 = vsel %vm393_vm0, %v2686_v46, %v950_v47 }
 0x4e4   : > { %985 = vrot.lane.b32.xlu1 %v2693_v1, %s2120_s14 }
 0x4e5   : > { %v2697_v48 = vpop.permute.xlu0 %951 }
 0x4e6   : > { %v1729_v49 = vpack.c.bf16 %v2697_v48, %v2686_v46  ;;  %v954_v51 = vpop.permute.xlu1 %953  ;;  %v976_v52 = vsel %vm393_vm0, 0.0, %v2697_v48 }
 0x4e7   : > { %1023 = vrot.lane.b32.xlu0 %v975_v0, %s2121_s16  ;;  %v2706_v53 = vsel %vm393_vm0, %v2697_v48, %v954_v51 }
 0x4e8   : > { %1027 = vrot.lane.b32.xlu1 %v976_v52, %s2121_s16  ;;  %v1727_v54 = vpack.c.bf16 %v2706_v53, %v2693_v1 }
 0x4e9   : > { %v2711_v55 = vpop.permute.xlu0 %955 }
 0x4ea   : > { %v958_v56 = vpop.permute.xlu1 %957  ;;  %v977_v8 = vsel %vm393_vm0, 0.0, %v2711_v55 }
 0x4eb   : > { %1025 = vrot.lane.b32.xlu0 %v2693_v1, %s2121_s16  ;;  %v2726_v6 = vsel %vm393_vm0, %v2711_v55, %v958_v56 }
 0x4ec   : > { %989 = vrot.lane.b32.xlu1 %v2706_v53, %s2120_s14 }
 0x4ed   : > { %v2717_v58 = vpop.permute.xlu0 %959 }
 0x4ee   : > { %v1734_v59 = vpack.c.bf16 %v2717_v58, %v2711_v55  ;;  %v978_v11 = vsel %vm393_vm0, 0.0, %v2717_v58 }
 0x4ef   : > { %987 = vrot.lane.b32.xlu0 %v976_v52, %s2120_s14 }
 0x4f0   : > { %v962_v62 = vpop.permute.xlu1 %961  ;;  %1029 = vrot.lane.b32.xlu1 %v2706_v53, %s2121_s16 }
 0x4f1   : > { %v1144_v63 = vpop.permute.xlu0 %1143  ;;  %v2730_v7 = vsel %vm393_vm0, %v2717_v58, %v962_v62 }
 0x4f2   : > { %v1732_v14 = vpack.c.bf16 %v2730_v7, %v2726_v6 }
 0x4f3   : > { %991 = vrot.lane.b32.xlu0 %v977_v8, %s2120_s14 }
 0x4f4   : > { %v2737_v16 = vpop.permute.xlu1 %1145  ;;  %993 = vrot.lane.b32.xlu1 %v2726_v6, %s2120_s14 }
 0x4f5   : > { %v1148_v4 = vpop.permute.xlu0 %1147  ;;  %v2750_v15 = vsel %vm516_vm1, %v1144_v63, %v2737_v16  ;;  %v1171_v26 = vsel %vm516_vm1, %v2737_v16, 0.0 }
 0x4f7   : > { %1031 = vrot.lane.b32.xlu0 %v977_v8, %s2121_s16 }
 0x4f8   : > { %v2742_v57 = vpop.permute.xlu1 %1149  ;;  %1065 = vrot.lane.b32.xlu1 %v2638_v31, %s2120_s14 }
 0x4f9   : > { %v1777_v5 = vpack.c.bf16 %v2742_v57, %v2737_v16  ;;  %v1152_v13 = vpop.permute.xlu0 %1151  ;;  %v2754_v20 = vsel %vm516_vm1, %v1148_v4, %v2742_v57  ;;  %v1172_v27 = vsel %vm516_vm1, %v2742_v57, 0.0 }
 0x4fa   : > { %v1780_v10 = vpack.c.bf16 %v2754_v20, %v2750_v15 }
 0x4fb   : > { %1033 = vrot.lane.b32.xlu0 %v2726_v6, %s2121_s16 }
 0x4fc   : > { %v2762_v12 = vpop.permute.xlu1 %1153  ;;  %1035 = vrot.lane.b32.xlu1 %v978_v11, %s2121_s16 }
 0x4fd   : > { %v1156_v21 = vpop.permute.xlu0 %1155  ;;  %v2772_v23 = vsel %vm516_vm1, %v1152_v13, %v2762_v12  ;;  %v1173_v17 = vsel %vm516_vm1, %v2762_v12, 0.0 }
 0x4ff   : > { %995 = vrot.lane.b32.xlu0 %v978_v11, %s2120_s14 }
 0x500   : > { %v2766_v22 = vpop.permute.xlu1 %1157  ;;  %997 = vrot.lane.b32.xlu1 %v2730_v7, %s2120_s14 }
 0x501   : > { %v2776_v24 = vsel %vm516_vm1, %v1156_v21, %v2766_v22  ;;  %v1174_v18 = vsel %vm516_vm1, %v2766_v22, 0.0 }
 0x502   : > { %v1785_v25 = vpack.c.bf16 %v2776_v24, %v2772_v23 }
 0x503   : > { %1063 = vrot.lane.b32.xlu0 %v2635_v29, %s2120_s14 }
 0x504   : > { %1069 = vrot.lane.b32.xlu1 %v2648_v36, %s2120_s14 }
 0x507   : > { %1067 = vrot.lane.b32.xlu0 %v2645_v35, %s2120_s14 }
 0x508   : > { %1073 = vrot.lane.b32.xlu1 %v2656_v2, %s2120_s14 }
 0x50b   : > { %1071 = vrot.lane.b32.xlu0 %v2654_v42, %s2120_s14 }
 0x50c   : > { %1077 = vrot.lane.b32.xlu1 %v2666_v45, %s2120_s14 }
 0x50f   : > { %1075 = vrot.lane.b32.xlu0 %v2662_v43, %s2120_s14 }
 0x510   : > { %1037 = vrot.lane.b32.xlu1 %v2730_v7, %s2121_s16 }
 0x513   : > { %1105 = vrot.lane.b32.xlu0 %v2638_v31, %s2121_s16 }
 0x514   : > { %1109 = vrot.lane.b32.xlu1 %v2648_v36, %s2121_s16 }
 0x517   : > { %1103 = vrot.lane.b32.xlu0 %v2635_v29, %s2121_s16 }
 0x518   : > { %1107 = vrot.lane.b32.xlu1 %v2645_v35, %s2121_s16 }
 0x51b   : > { %1113 = vrot.lane.b32.xlu0 %v2656_v2, %s2121_s16 }
 0x51c   : > { %1117 = vrot.lane.b32.xlu1 %v2666_v45, %s2121_s16 }
 0x51f   : > { %1111 = vrot.lane.b32.xlu0 %v2654_v42, %s2121_s16 }
 0x520   : > { %1115 = vrot.lane.b32.xlu1 %v2662_v43, %s2121_s16 }
 0x523   : > { %1179 = vrot.lane.b32.xlu0 %v2750_v15, %s2120_s14 }
 0x524   : > { %1181 = vrot.lane.b32.xlu1 %v1171_v26, %s2120_s14 }
 0x527   : > { %1183 = vrot.lane.b32.xlu0 %v2754_v20, %s2120_s14 }
 0x528   : > { %1185 = vrot.lane.b32.xlu1 %v1172_v27, %s2120_s14 }
 0x52b   : > { %1187 = vrot.lane.b32.xlu0 %v2772_v23, %s2120_s14 }
 0x52c   : > { %1189 = vrot.lane.b32.xlu1 %v1173_v17, %s2120_s14 }
 0x52f   : > { %1191 = vrot.lane.b32.xlu0 %v2776_v24, %s2120_s14 }
 0x530   : > { %1193 = vrot.lane.b32.xlu1 %v1174_v18, %s2120_s14 }
 0x533   : > { %1221 = vrot.lane.b32.xlu0 %v1171_v26, %s2121_s16 }
 0x534   : > { %1225 = vrot.lane.b32.xlu1 %v1172_v27, %s2121_s16 }
 0x537   : > { %1219 = vrot.lane.b32.xlu0 %v2750_v15, %s2121_s16  ;;  %v927_v15 = vld [vmem:[#allocation7] sm:$0xff] }
 0x538   : > { %1223 = vrot.lane.b32.xlu1 %v2754_v20, %s2121_s16 }
 0x53b   : > { %1229 = vrot.lane.b32.xlu0 %v1173_v17, %s2121_s16 }
 0x53c   : > { %1233 = vrot.lane.b32.xlu1 %v1174_v18, %s2121_s16 }
 0x53f   : > { %1227 = vrot.lane.b32.xlu0 %v2772_v23, %s2121_s16 }
 0x540   : > { %1231 = vrot.lane.b32.xlu1 %v2776_v24, %s2121_s16  ;;  %v934_v24 = vld [vmem:[#allocation7 + $0x38] sm:$0xff]  ;;  %s365_s16 = sand.u32 1, %s2101_s10  }
 0x541   : > { %s1623_s30 = sshll.u32 %s365_s16, 6  ;;  %s3022_s20 = scalar_lea.sflag [#allocation4], %s365_s16 }
 0x542   : > { %s3001_s18 = scalar_lea.vmem [#allocation8], %s1623_s30 }
 0x543   : > { %1275 = vperm.xlu0 %1897, %v1261_v28   ;;  %s1520_s24 = sshll.u32 %s3001_s18, 4  ;;  %s3011_s24 = int_to_ptr.vmem [resolvable:$true] %s1520_s24 }
 0x544   : > { %1280 = vperm.xlu1 %1898, %v1262_v30   ;;  %s2039_s14 = scalar_lea.vmem %s3011_s24, 1024  ;;  %p2046_p13 = scmp.lt.s32.totalorder %s3011_s24, %s2044_s22 }
 0x545   : > { %p2040_p12 = scmp.ne.s32.totalorder %s3011_s24, %s2039_s14  ;;  %p2047_p1 = scmp.lt.s32.totalorder %s2045_s25, %s2039_s14 }
 0x547   : > { %1265 = vperm.xlu0 %1897, %v1259_v32   ;;  %p2041_p8 = pnand %p2040_p12, %p3103_p7  ;;  %p2048_p6 = por %p2047_p1, %p2046_p13 }
 0x548   : > { %1270 = vperm.xlu1 %1898, %v1260_v33  }
 0x549   : > { %p2042_p11 = pneg %p2041_p8 }
 0x54b   : > { %p2049_p9 = pnand %p2048_p6, %p2042_p11 }
 0x555   : > { %v984_v34 = vpop.permute.xlu0 %983 }
 0x556   : > { %v986_v37 = vpop.permute.xlu1 %985  ;;  %v1011_v0 = vsel %vm412_vm2, 0.0, %v984_v34 }
 0x557   : > { %v999_v51 = vsel %vm412_vm2, %v984_v34, %v986_v37  ;;  %v1015_v8 = vmul.f32 %v1011_v0, %v2438_v38 }
 0x558   : > { %v1016_v13 = vmul.f32 %v999_v51, %v2441_v40 }
 0x559   : > { %v1024_v41 = vpop.permute.xlu0 %1023 }
 0x55a   : > { %v1028_v3 = vpop.permute.xlu1 %1027 }
 0x55d   : > { %v1026_v44 = vpop.permute.xlu0 %1025 }
 0x55e   : > { %v990_v47 = vpop.permute.xlu1 %989 }
 0x561   : > { %v988_v52 = vpop.permute.xlu0 %987 }
 0x562   : > { %v1000_v56 = vsel %vm412_vm2, %v988_v52, %v990_v47  ;;  %v1012_v62 = vsel %vm412_vm2, 0.0, %v988_v52  ;;  %v1030_v63 = vpop.permute.xlu1 %1029 }
 0x563   : > { %v1017_v4 = vmul.f32 %v1012_v62, %v2438_v38  ;;  %v1018_v11 = vmul.f32 %v1000_v56, %v2441_v40 }
 0x565   : > { %v992_v21 = vpop.permute.xlu0 %991  ;;  %v1719_v26 = vpack.c.bf16 %v1018_v11, %v1016_v13  ;;  %v1721_v27 = vpack.c.bf16 %v1017_v4, %v1015_v8 }
 0x566   : > { %v994_v17 = vpop.permute.xlu1 %993  ;;  %v1013_v34 = vsel %vm412_vm2, 0.0, %v992_v21 }
 0x567   : > { %1720 = vmatprep.subr.bf16.mxu1 %v1719_v26  ;;  %v1001_v32 = vsel %vm412_vm2, %v992_v21, %v994_v17  ;;  %v1019_v62 = vmul.f32 %v1013_v34, %v2438_v38  ;;  %v1052_v21 = vsel %vm444_vm3, %v1030_v63, 0.0  ;;  %v1051_v17 = vsel %vm444_vm3, %v1026_v44, 0.0 }
 0x568   : > { %1722 = vmatpush1.bf16.msra.mxu1 %v1721_v27  ;;  %v1020_v52 = vmul.f32 %v1001_v32, %v2441_v40  ;;  %v1040_v32 = vsel %vm444_vm3, %v1028_v3, %v1030_v63  ;;  %v1039_v34 = vsel %vm444_vm3, %v1024_v41, %v1026_v44 }
 0x569   : > { %v1032_v18 = vpop.permute.xlu0 %1031  ;;  %v1057_v1 = vmul.f32 %v1040_v32, %v2463_v60  ;;  %v1055_v41 = vmul.f32 %v1039_v34, %v2463_v60 }
 0x56a   : > { %v1066_v19 = vpop.permute.xlu1 %1065 }
 0x56b   : > { %v1739_v7 = vpack.c.bf16 %v1057_v1, %v1055_v41 }
 0x56d   : > { %v1034_v28 = vpop.permute.xlu0 %1033 }
 0x56e   : > { %v1036_v30 = vpop.permute.xlu1 %1035  ;;  %v1053_v3 = vsel %vm444_vm3, %v1034_v28, 0.0 }
 0x571   : > { %v996_v33 = vpop.permute.xlu0 %995 }
 0x572   : > { %v1014_v37 = vsel %vm412_vm2, 0.0, %v996_v33  ;;  %v998_v47 = vpop.permute.xlu1 %997 }
 0x573   : > { %v1021_v0 = vmul.f32 %v1014_v37, %v2438_v38  ;;  %v1002_v51 = vsel %vm412_vm2, %v996_v33, %v998_v47  ;;  %v1058_v33 = vmul.f32 %v1052_v21, %v2452_v50  ;;  %v1056_v47 = vmul.f32 %v1051_v17, %v2452_v50 }
 0x574   : > { %v1022_v56 = vmul.f32 %v1002_v51, %v2441_v40 }
 0x575   : > { %v1064_v8 = vpop.permute.xlu0 %1063  ;;  %v1725_v11 = vpack.c.bf16 %v1021_v0, %v1019_v62  ;;  %v1737_v44 = vpack.c.bf16 %v1058_v33, %v1056_v47 }
 0x576   : > { %v1070_v4 = vpop.permute.xlu1 %1069  ;;  %v1723_v13 = vpack.c.bf16 %v1022_v56, %v1020_v52  ;;  %v1079_v63 = vsel %vm412_vm2, %v1064_v8, %v1066_v19  ;;  %v1091_v52 = vsel %vm412_vm2, 0.0, %v1064_v8 }
 0x577   : > { %v1096_v19 = vmul.f32 %v1079_v63, %v2441_v40  ;;  %v1095_v17 = vmul.f32 %v1091_v52, %v2438_v38 }
 0x578   : > { %1724 = vmatprep.subr.bf16.mxu1 %v1723_v13 }
 0x579   : > { %v1068_v26 = vpop.permute.xlu0 %1067  ;;  %1726 = vmatpush1.bf16.msra.mxu1 %v1725_v11 }
 0x57a   : > { %1728 = vmatprep.subr.bf16.mxu1 %v1727_v54  ;;  %v1074_v27 = vpop.permute.xlu1 %1073  ;;  %v1041_v54 = vsel %vm444_vm3, %v1032_v18, %v1034_v28  ;;  %v1080_v46 = vsel %vm412_vm2, %v1068_v26, %v1070_v4  ;;  %v1092_v0 = vsel %vm412_vm2, 0.0, %v1068_v26 }
 0x57b   : > { %v1098_v55 = vmul.f32 %v1080_v46, %v2441_v40  ;;  %v1097_v4 = vmul.f32 %v1092_v0, %v2438_v38 }
 0x57d   : > { %v1072_v37 = vpop.permute.xlu0 %1071  ;;  %1731 = vmatpush1.bf16.msk.msra.mxu1 %vm2476_vm5, %v1729_v49  ;;  %v1059_v49 = vmul.f32 %v1041_v54, %v2463_v60  ;;  %v1745_v26 = vpack.c.bf16 %v1098_v55, %v1096_v19  ;;  %v1747_v1 = vpack.c.bf16 %v1097_v4, %v1095_v17 }
 0x57e   : > { %1733 = vmatprep.subr.bf16.mxu1 %v1732_v14  ;;  %v1078_v53 = vpop.permute.xlu1 %1077  ;;  %v1060_v14 = vmul.f32 %v1053_v3, %v2452_v50  ;;  %v1081_v13 = vsel %vm412_vm2, %v1072_v37, %v1074_v27  ;;  %v1093_v8 = vsel %vm412_vm2, 0.0, %v1072_v37  ;;  %v1753_v37 = vpack.c.bf16 %v2648_v36, %v2638_v31 }
 0x57f   : > { %v1100_v33 = vmul.f32 %v1081_v13, %v2441_v40 }
 0x581   : > { %v1076_v48 = vpop.permute.xlu0 %1075  ;;  %1736 = vmatpush1.bf16.msk.msra.mxu1 %vm2476_vm5, %v1734_v59 }
 0x582   : > { %1738 = vmatprep.subr.bf16.mxu1 %v1737_v44  ;;  %v1038_v6 = vpop.permute.xlu1 %1037  ;;  %v1082_v59 = vsel %vm412_vm2, %v1076_v48, %v1078_v53  ;;  %v1094_v11 = vsel %vm412_vm2, 0.0, %v1076_v48  ;;  %v1099_v53 = vmul.f32 %v1093_v8, %v2438_v38 }
 0x583   : > { %v1042_v18 = vsel %vm444_vm3, %v1036_v30, %v1038_v6  ;;  %v1054_v28 = vsel %vm444_vm3, %v1038_v6, 0.0  ;;  %v1102_v21 = vmul.f32 %v1082_v59, %v2441_v40  ;;  %v1101_v47 = vmul.f32 %v1094_v11, %v2438_v38 }
 0x584   : > { %v1061_v9 = vmul.f32 %v1042_v18, %v2463_v60  ;;  %v1062_v58 = vmul.f32 %v1054_v28, %v2452_v50  ;;  %v1755_v6 = vpack.c.bf16 %v2645_v35, %v2635_v29  ;;  %v1757_v28 = vpack.c.bf16 %v2666_v45, %v2656_v2 }
 0x585   : > { %v1106_v51 = vpop.permute.xlu0 %1105  ;;  %1740 = vmatpush1.bf16.msra.mxu1 %v1739_v7  ;;  %v1749_v27 = vpack.c.bf16 %v1102_v21, %v1100_v33  ;;  %v1751_v3 = vpack.c.bf16 %v1101_v47, %v1099_v53 }
 0x586   : > { %v1110_v56 = vpop.permute.xlu1 %1109  ;;  %v1741_v30 = vpack.c.bf16 %v1062_v58, %v1060_v14  ;;  %v1743_v62 = vpack.c.bf16 %v1061_v9, %v1059_v49  ;;  %v1131_v44 = vsel %vm444_vm3, %v1106_v51, 0.0  ;;  %v1759_v9 = vpack.c.bf16 %v2662_v43, %v2654_v42 }
 0x587   : > { %v1132_v46 = vsel %vm444_vm3, %v1110_v56, 0.0  ;;  %v1136_v7 = vmul.f32 %v1131_v44, %v2452_v50 }
 0x588   : > { %1742 = vmatprep.subr.bf16.mxu1 %v1741_v30  ;;  %v1138_v14 = vmul.f32 %v1132_v46, %v2452_v50 }
 0x589   : > { %v1104_v32 = vpop.permute.xlu0 %1103  ;;  %1744 = vmatpush1.bf16.msra.mxu1 %v1743_v62 }
 0x58a   : > { %1746 = vmatprep.subr.bf16.mxu1 %v1745_v26  ;;  %v1108_v34 = vpop.permute.xlu1 %1107  ;;  %v1119_v63 = vsel %vm444_vm3, %v1104_v32, %v1106_v51  ;;  %v1761_v58 = vpack.c.bf16 %v1138_v14, %v1136_v7 }
 0x58b   : > { %v1120_v18 = vsel %vm444_vm3, %v1108_v34, %v1110_v56  ;;  %v1135_v55 = vmul.f32 %v1119_v63, %v2463_v60 }
 0x58c   : > { %v1137_v29 = vmul.f32 %v1120_v18, %v2463_v60 }
 0x58d   : > { %v1114_v54 = vpop.permute.xlu0 %1113  ;;  %1748 = vmatpush1.bf16.msra.mxu1 %v1747_v1 }
 0x58e   : > { %1750 = vmatprep.subr.bf16.mxu1 %v1749_v27  ;;  %v1118_v41 = vpop.permute.xlu1 %1117  ;;  %v1133_v31 = vsel %vm444_vm3, %v1114_v54, 0.0  ;;  %v1763_v56 = vpack.c.bf16 %v1137_v29, %v1135_v55 }
 0x58f   : > { %v1134_v36 = vsel %vm444_vm3, %v1118_v41, 0.0  ;;  %v1140_v59 = vmul.f32 %v1133_v31, %v2452_v50 }
 0x590   : > { %v1142_v2 = vmul.f32 %v1134_v36, %v2452_v50 }
 0x591   : > { %v1112_v48 = vpop.permute.xlu0 %1111  ;;  %1752 = vmatpush1.bf16.msra.mxu1 %v1751_v3 }
 0x592   : > { %1754 = vmatprep.subr.bf16.mxu1 %v1753_v37  ;;  %v1116_v49 = vpop.permute.xlu1 %1115  ;;  %v1121_v45 = vsel %vm444_vm3, %v1112_v48, %v1114_v54  ;;  %v1765_v11 = vpack.c.bf16 %v1142_v2, %v1140_v59 }
 0x593   : > { %v1122_v51 = vsel %vm444_vm3, %v1116_v49, %v1118_v41  ;;  %v1139_v30 = vmul.f32 %v1121_v45, %v2463_v60 }
 0x594   : > { %v1141_v62 = vmul.f32 %v1122_v51, %v2463_v60  ;;  %v931_v51 = vld [vmem:[#allocation7 + $0x20] sm:$0xff] }
 0x595   : > { %v1180_v0 = vpop.permute.xlu0 %1179  ;;  %1756 = vmatpush1.bf16.msra.mxu1 %v1755_v6 }
 0x596   : > { %1758 = vmatprep.subr.bf16.mxu1 %v1757_v28  ;;  %v1182_v35 = vpop.permute.xlu1 %1181  ;;  %v1207_v26 = vsel %vm412_vm2, 0.0, %v1180_v0  ;;  %v1767_v33 = vpack.c.bf16 %v1141_v62, %v1139_v30  ;;  %v933_v30 = vld [vmem:[#allocation7 + $0x30] sm:$0xff] }
 0x597   : > { %v1195_v42 = vsel %vm412_vm2, %v1180_v0, %v1182_v35  ;;  %v1211_v47 = vmul.f32 %v1207_v26, %v2438_v38  ;;  %v937_v62 = vld [vmem:[#allocation7 + $0x50] sm:$0xff] }
 0x598   : > { %v1212_v17 = vmul.f32 %v1195_v42, %v2441_v40  ;;  %v936_v42 = vld [vmem:[#allocation7 + $0x48] sm:$0xff] }
 0x599   : > { %v1184_v52 = vpop.permute.xlu0 %1183  ;;  %1760 = vmatpush1.bf16.msra.mxu1 %v1759_v9  ;;  %v1782_v9 = vpack.c.bf16 %v2766_v22, %v2762_v12 }
 0x59a   : > { %1762 = vmatprep.subr.bf16.mxu1 %v1761_v58  ;;  %v1186_v19 = vpop.permute.xlu1 %1185  ;;  %v1208_v4 = vsel %vm412_vm2, 0.0, %v1184_v52 }
 0x59b   : > { %v1196_v43 = vsel %vm412_vm2, %v1184_v52, %v1186_v19  ;;  %v1213_v8 = vmul.f32 %v1208_v4, %v2438_v38  ;;  %v938_v4 = vld [vmem:[#allocation7 + $0x58] sm:$0xff] }
 0x59c   : > { %v1214_v13 = vmul.f32 %v1196_v43, %v2441_v40  ;;  %v935_v43 = vld [vmem:[#allocation7 + $0x40] sm:$0xff] }
 0x59d   : > { %v1188_v21 = vpop.permute.xlu0 %1187  ;;  %1764 = vmatpush1.bf16.msra.mxu1 %v1763_v56  ;;  %v1771_v46 = vpack.c.bf16 %v1213_v8, %v1211_v47 }
 0x59e   : > { %1766 = vmatprep.subr.bf16.mxu1 %v1765_v11  ;;  %v1190_v32 = vpop.permute.xlu1 %1189  ;;  %v1769_v34 = vpack.c.bf16 %v1214_v13, %v1212_v17  ;;  %v1209_v53 = vsel %vm412_vm2, 0.0, %v1188_v21 }
 0x59f   : > { %v1197_v1 = vsel %vm412_vm2, %v1188_v21, %v1190_v32  ;;  %v1215_v49 = vmul.f32 %v1209_v53, %v2438_v38 }
 0x5a0   : > { %v1216_v37 = vmul.f32 %v1197_v1, %v2441_v40 }
 0x5a1   : > { %v1192_v27 = vpop.permute.xlu0 %1191  ;;  %1768 = vmatpush1.bf16.msra.mxu1 %v1767_v33 }
 0x5a2   : > { %v1210_v54 = vsel %vm412_vm2, 0.0, %v1192_v27  ;;  %1770 = vmatprep.subr.bf16.mxu1 %v1769_v34  ;;  %v1194_v41 = vpop.permute.xlu1 %1193 }
 0x5a3   : > { %v1217_v3 = vmul.f32 %v1210_v54, %v2438_v38  ;;  %v1198_v44 = vsel %vm412_vm2, %v1192_v27, %v1194_v41 }
 0x5a4   : > { %v1218_v48 = vmul.f32 %v1198_v44, %v2441_v40 }
 0x5a5   : > { %v1222_v6 = vpop.permute.xlu0 %1221  ;;  %1772 = vmatpush1.bf16.msra.mxu1 %v1771_v46  ;;  %v1775_v31 = vpack.c.bf16 %v1217_v3, %v1215_v49 }
 0x5a6   : > { %v1247_v7 = vsel %vm444_vm3, %v1222_v6, 0.0  ;;  %v1226_v14 = vpop.permute.xlu1 %1225  ;;  %v1773_v63 = vpack.c.bf16 %v1218_v48, %v1216_v37 }
 0x5a7   : > { %v1252_v18 = vmul.f32 %v1247_v7, %v2452_v50  ;;  %v1248_v28 = vsel %vm444_vm3, %v1226_v14, 0.0 }
 0x5a8   : > { %v1254_v36 = vmul.f32 %v1248_v28, %v2452_v50  ;;  %1774 = vmatprep.subr.bf16.mxu1 %v1773_v63 }
 0x5a9   : > { %v1220_v0 = vpop.permute.xlu0 %1219  ;;  %1776 = vmatpush1.bf16.msra.mxu1 %v1775_v31 }
 0x5aa   : > { %v1235_v40 = vsel %vm444_vm3, %v1220_v0, %v1222_v6  ;;  %1779 = vmatprep.subr.msk.bf16.mxu1 %vm2515_vm6, %v1777_v5  ;;  %v1224_v38 = vpop.permute.xlu1 %1223  ;;  %v1787_v55 = vpack.c.bf16 %v1254_v36, %v1252_v18 }
 0x5ab   : > { %v1251_v29 = vmul.f32 %v1235_v40, %v2463_v60  ;;  %v1236_v35 = vsel %vm444_vm3, %v1224_v38, %v1226_v14 }
 0x5ac   : > { %v1253_v58 = vmul.f32 %v1236_v35, %v2463_v60  ;;  %1788 = vmatprep.subr.bf16.mxu0 %v1787_v55 }
 0x5ad   : > { %v1230_v59 = vpop.permute.xlu0 %1229  ;;  %1781 = vmatpush1.bf16.msra.mxu1 %v1780_v10 }
 0x5ae   : > { %v1789_v16 = vpack.c.bf16 %v1253_v58, %v1251_v29  ;;  %v1249_v57 = vsel %vm444_vm3, %v1230_v59, 0.0  ;;  %1784 = vmatprep.subr.msk.bf16.mxu1 %vm2515_vm6, %v1782_v9  ;;  %v1234_v5 = vpop.permute.xlu1 %1233 }
 0x5af   : > { %v1256_v2 = vmul.f32 %v1249_v57, %v2452_v50  ;;  %v1250_v45 = vsel %vm444_vm3, %v1234_v5, 0.0 }
 0x5b0   : > { %v1258_v12 = vmul.f32 %v1250_v45, %v2452_v50  ;;  %1790 = vmatpush1.bf16.msra.mxu0 %v1789_v16  ;;  %v930_v50 = vld [vmem:[#allocation7 + $0x18] sm:$0xff] }
 0x5b1   : > { %v1228_v22 = vpop.permute.xlu0 %1227  ;;  %1786 = vmatpush1.bf16.msra.mxu1 %v1785_v25  ;;  %v929_v25 = vld [vmem:[#allocation7 + $0x10] sm:$0xff] }
 0x5b2   : > { %v1237_v20 = vsel %vm444_vm3, %v1228_v22, %v1230_v59  ;;  %1795 = vmatprep.subr.bf16.mxu1 %v1787_v55  ;;  %v1232_v10 = vpop.permute.xlu1 %1231  ;;  %v1791_v61 = vpack.c.bf16 %v1258_v12, %v1256_v2 }
 0x5b3   : > { %v1255_v52 = vmul.f32 %v1237_v20, %v2463_v60  ;;  %v1238_v19 = vsel %vm444_vm3, %v1232_v10, %v1234_v5 }
 0x5b4   : > { %v1257_v56 = vmul.f32 %v1238_v19, %v2463_v60  ;;  %1361 = vmatmul.mubr.f32.vlgmr.msra.gmra.mrb[0].mxu1 %v927_v15  ;;  %1792 = vmatprep.subr.bf16.mxu0 %v1791_v61  ;;  %v932_v60 = vld [vmem:[#allocation7 + $0x28] sm:$0xff] }
 0x5b5   : > { %1797 = vmatpush1.bf16.msra.mxu1 %v1789_v16  ;;  %1366 = vmatprep.mubr.f32.mxu1 %v931_v51 }
 0x5b6   : > { %v1793_v23 = vpack.c.bf16 %v1257_v56, %v1255_v52  ;;  %1796 = vmatprep.subr.bf16.mxu1 %v1791_v61 }
 0x5b8   : > { %1367 = vmatmul.mubr.f32.gmra.mrb[2].mxu1 %v930_v50  ;;  %1794 = vmatpush1.bf16.msra.mxu0 %v1793_v23 }
 0x5b9   : > { %1798 = vmatpush1.bf16.msra.mxu1 %v1793_v23  ;;  %1372 = vmatprep.mubr.f32.mxu1 %v934_v24 }
 0x5bb   : > { %1652 = vmatmul.mubr.msk.f32.vlgmr.msra.gmra.mrb[10].mxu0 %vm1283_vm11, %v929_v25 }
 0x5bc   : > { %1373 = vmatmul.mubr.f32.gmra.mrb[4].mxu1 %v933_v30  ;;  %1455 = vmatprep.mubr.f32.mxu0 %v2123_v39 }
 0x5bd   : > { %1378 = vmatprep.mubr.f32.mxu1 %v937_v62 }
 0x5bf   : > { %1653 = vmatmul.mubr.msk.f32.gmra.mrb[12].mxu0 %vm1283_vm11, %v932_v60 }
 0x5c0   : > { %1379 = vmatmul.mubr.f32.gmra.mrb[6].mxu1 %v936_v42  ;;  %1461 = vmatprep.mubr.f32.mxu0 %v2123_v39 }
 0x5c1   : > { %1467 = vmatprep.mubr.f32.mxu1 %v2123_v39 }
 0x5c2   : > { %v1276_v13 = vpop.permute.xlu0 %1275 }
 0x5c3   : > { %1654 = vmatmul.mubr.msk.f32.gmra.mrb[14].mxu0 %vm1283_vm11, %v935_v43  ;;  %v1281_v26 = vpop.permute.xlu1 %1280 }
 0x5c6   : > { %v1266_v32 = vpop.permute.xlu0 %1265 }
 0x5c7   : > { %v1271_v53 = vpop.permute.xlu1 %1270 }
 0x5c8   : > { %1655 = vmatmul.mubr.msk.f32.vlgmr.msra.gmra.mrb[6].mxu1 %vm1283_vm11, %v938_v4 }
 0x687   : > { %v1362_v11 = vpop.f32.mrb[0].mxu1 }
 0x688   : > { %v1364_v21 = vpop.f32.mrb[1].mxu1  ;;  %v1363_v33 = vadd.f32 %v1362_v11, %v1266_v32 }
 0x689   : > { %v1365_v34 = vadd.f32 %v1364_v21, %v1266_v32 }
 0x68b   : > { %v1368_v17 = vpop.f32.mrb[2].mxu1 }
 0x68c   : > { %v1370_v8 = vpop.f32.mrb[3].mxu1  ;;  %v1369_v3 = vadd.f32 %v1368_v17, %v1271_v53 }
 0x68d   : > { %v1371_v44 = vadd.f32 %v1370_v8, %v1271_v53 }
 0x68e   : > { %v1451_v47 = vpop.f32.mrb[10].mxu0 }
 0x68f   : > { %v1452_v1 = vadd.f32 %v1451_v47, %v1363_v33  ;;  %v1374_v39 = vpop.f32.mrb[4].mxu1  ;;  %v1453_v27 = vpop.f32.mrb[11].mxu0 }
 0x690   : > { %v1454_v54 = vadd.f32 %v1453_v27, %v1365_v34  ;;  %v1376_v41 = vpop.f32.mrb[5].mxu1  ;;  %v1375_v6 = vadd.f32 %v1374_v39, %v1276_v13 }
 0x691   : > { %1498 = vst [vmem:[%s3001_s18] sm:$0xff] %v1452_v1  ;;  %v1377_v7 = vadd.f32 %v1376_v41, %v1276_v13 }
 0x692   : > { %1499 = vst [vmem:[%s3001_s18 + $0x8] sm:$0xff] %v1454_v54  ;;  %v1457_v46 = vpop.f32.mrb[12].mxu0 }
 0x693   : > { %v1458_v37 = vadd.f32 %v1457_v46, %v1369_v3  ;;  %v1459_v48 = vpop.f32.mrb[13].mxu0 }
 0x694   : > { %v1460_v49 = vadd.f32 %v1459_v48, %v1371_v44 }
 0x695   : > { %1500 = vst [vmem:[%s3001_s18 + $0x10] sm:$0xff] %v1458_v37 }
 0x696   : > { %1501 = vst [vmem:[%s3001_s18 + $0x18] sm:$0xff] %v1460_v49  ;;  %v1463_v14 = vpop.f32.mrb[14].mxu0 }
 0x697   : > { %v1464_v63 = vadd.f32 %v1463_v14, %v1375_v6  ;;  %v1465_v18 = vpop.f32.mrb[15].mxu0 }
 0x698   : > { %v1466_v28 = vadd.f32 %v1465_v18, %v1377_v7 }
 0x699   : > { %v1474_v31 = vsub.f32 0.0, %v1464_v63 }
 0x69a   : > { %v1475_v36 = vsub.f32 0.0, %v1466_v28 }
 0x69b   : > { %v1478_v0 = vmul.f32 1.442695, %v1474_v31  ;;  %v1469_v40 = vpop.f32.mrb[6].mxu1 }
 0x69c   : > { %v1480_v38 = vmul.f32 1.442695, %v1475_v36  ;;  %v1811_v55 = vadd.f32 %v1469_v40, %v1281_v26  ;;  %v1471_v29 = vpop.f32.mrb[7].mxu1 }
 0x69d   : > { %1939 = vpow2.f32 %v1478_v0  ;;  %v1812_v35 = vadd.f32 %v1471_v29, %v1281_v26 }
 0x69e   : > { %1941 = vpow2.f32 %v1480_v38  ;;  %v1476_v9 = vsub.f32 0.0, %v1811_v55 }
 0x69f   : > { %v1477_v58 = vsub.f32 0.0, %v1812_v35 }
 0x6a0   : > { %v1482_v59 = vmul.f32 1.442695, %v1476_v9 }
 0x6a1   : > { %v1484_v16 = vmul.f32 1.442695, %v1477_v58 }
 0x6a2   : > { %1943 = vpow2.f32 %v1482_v59 }
 0x6a3   : > { %1945 = vpow2.f32 %v1484_v16 }
 0x6a7   : > { %v1940_v57 = vpop.eup %1939 }
 0x6a8   : > { %v1942_v5 = vpop.eup %1941  ;;  %v1486_v2 = vadd.f32 1.0, %v1940_v57 }
 0x6a9   : > { %v1487_v45 = vadd.f32 1.0, %v1942_v5 }
 0x6aa   : > { %1947 = vrcp.f32 %v1486_v2 }
 0x6ab   : > { %1949 = vrcp.f32 %v1487_v45 }
 0x6ac   : > { %v1944_v12 = vpop.eup %1943 }
 0x6ad   : > { %v1946_v22 = vpop.eup %1945  ;;  %v1488_v15 = vadd.f32 1.0, %v1944_v12 }
 0x6ae   : > { %v1489_v20 = vadd.f32 1.0, %v1946_v22 }
 0x6af   : > { %1951 = vrcp.f32 %v1488_v15 }
 0x6b0   : > { %1953 = vrcp.f32 %v1489_v20 }
 0x6b4   : > { %v1948_v10 = vpop.eup %1947 }
 0x6b5   : > { %v1950_v61 = vpop.eup %1949  ;;  %1502 = vst [vmem:[%s3001_s18 + $0x20] sm:$0xff] %v1948_v10 }
 0x6b6   : > { %1503 = vst [vmem:[%s3001_s18 + $0x28] sm:$0xff] %v1950_v61 }
 0x6b9   : > { %v1952_v51 = vpop.eup %1951 }
 0x6ba   : > { %v1954_v52 = vpop.eup %1953  ;;  %1504 = vst [vmem:[%s3001_s18 + $0x30] sm:$0xff] %v1952_v51 }
 0x6bb   : > { %1505 = vst [vmem:[%s3001_s18 + $0x38] sm:$0xff] %v1954_v52 }
 0x6bc   : > { %2052 = shalt.err (!%p2049_p9)
}
 0x6bd   : > { %s2053_s27 = scalar_lea.hbm %s3016_s17, 1024  ;;  %s2057_s23 = scalar_lea.hbm %s3073_s9, 2048 }
 0x6be   : > { %p2054_p2 = scmp.ne.s32.totalorder %s3016_s17, %s2053_s27  ;;  %p2058_p5 = scmp.lt.u32.totalorder %s3016_s17, %s3073_s9 }
 0x6bf   : > { %p2059_p10 = scmp.lt.u32.totalorder %s2057_s23, %s2053_s27  ;;  %p2061_p12 = scmp.lt.u32.totalorder %s2053_s27, %s3016_s17 }
 0x6c0   : > { %p2055_p3 = pnand %p2054_p2, %p3103_p7 }
 0x6c1   : > { %p2060_p4 = por %p2059_p10, %p2058_p5 }
 0x6c2   : > { %p2056_p0 = pneg %p2055_p3 }
 0x6c3   : > { %p2062_p8 = por %p2061_p12, %p2060_p4 }
 0x6c5   : > { %p2063_p11 = pnand %p2062_p8, %p2056_p0 }
 0x6c7   : > { %2066 = shalt.err (!%p2063_p11)
}
 0x6c8   : > { %s2126_s18 = smov 256  }
 0x6c9   : > { %1827 = dma.vmem_to_hbm [thread:$0]  (%p3103_p7), %s3011_s24, 1024, %s3016_s17, %s3022_s20, %s2126_s18, %s2126_s18, %s2118_s15  }
 0x6ca PF: > { %s3104_s28 = sld [smem:[#allocation12_spill]]  ;;  %s3105_s21 = sld [smem:[#allocation16_spill]] }
 0x6cb   : > { %p1849_p13 = scmp.ge.s32.totalorder %s2109_s12, 2 }
 0x6d0   : > { %s1535_s11 = sand.u32 1, %s3104_s28   ;;  %p3106_p1 = scmp.ne.s32.totalorder %s3105_s21, 0 }
 0x6d1   : > { %s1536_s14 = scalar_lea.sflag [#allocation4], %s1535_s11 }
 0x6d2   : > { %p1840_p6 = pnand %p1849_p13, %p3106_p1 }
 0x6d4   : > { %2092 = dma.done.wait (!%p1840_p6), %s1536_s14, 1024  }
 0x6d5   : > { %2094 = vsyncadd (!%p1840_p6), %s1536_s14, 4294966272  ;;  %s3107_s12 = sld [smem:[#allocation14_spill]]  ;;  %s3108_s13 = sld [smem:[#allocation13_spill]] }
 0x6d6   : > { %s3109_s11 = sld [smem:[#allocation15_spill]]  ;;  %s3110_s30 = smov %s2101_s10 }
 0x6db   : > { %p21_p9 = scmp.ge.s32.totalorder %s3107_s12, 4   ;;  %s3111_s10 = smov %s3108_s13 }
 0x6dd   :  { %23 = sbr.rel (!%p21_p9) target bundleno = 5 (0x5), region = 104 }
 0x6e4   :  { %1541 = vsyncpa [#allocation3], 1 }
 0x6e5   :  { %1543 = vsyncpa [#allocation3 + $0x1], 1 }
 0x6e6   :  { %1544 = vsyncpa [#allocation6], 1 }
 0x6e7   :  { %1545 = vsyncpa [#allocation4], 1 }
 0x6e8   :  { %1547 = vsyncpa [#allocation4 + $0x1], 1 }

</bundles_post_ra>
